<compile_context>
chip_gen: v5e
topology: v5e:2x2
jax: 0.10.0
libtpu: 0.0.40
codegen_flags: <defaults>
</compile_context>

<pallas_src>
import functools

import numpy as np
import jax
import jax.numpy as jnp
from jax.experimental import pallas as pl
from jax.experimental.pallas import tpu as pltpu

# Node-attribute vocabulary codes (the reference `CODE` dict is external to the module).
CODE = {'input0': 0, 'input1': 1, 'output': 2}

_VMEM = functools.partial(pl.BlockSpec, memory_space=pltpu.MemorySpace.VMEM)
_SMEM = functools.partial(pl.BlockSpec, memory_space=pltpu.MemorySpace.SMEM)


def _mm(a, b):
    return jnp.dot(a, b, preferred_element_type=jnp.float32)


def _leaky(x):
    return jnp.where(x >= 0.0, x, 0.2 * x)            # F.leaky_relu(., 0.2)


def _l2norm(x):
    # F.normalize(x, 2, dim=-1) == x / max(||x||, 1e-12); rsqrt runs on the EUP.
    ss = jnp.sum(x * x, axis=-1, keepdims=True)
    return x * jax.lax.rsqrt(jnp.maximum(ss, 1e-24))


# ----------------------------------------------------------------------------------
# Kernel 1: NodeInit 'start' path (Linear -> LeakyReLU -> Linear), one call for both
# input nodes of every graph (rows [0:B] = node0, rows [B:2B] = node1).
# ----------------------------------------------------------------------------------
def _start_mlp_kernel(x_ref, w1_ref, b1_ref, w2_ref, b2_ref, o_ref):
    h = _leaky(_mm(x_ref[...], w1_ref[...]) + b1_ref[...])
    o_ref[...] = _mm(h, w2_ref[...]) + b2_ref[...]


# ----------------------------------------------------------------------------------
# Kernel 2: one full StepGenerator step, fully fused.
# ----------------------------------------------------------------------------------
def _step_kernel(scal_ref, h_ref, adj_ref, z_ref,
                 wsrc_ref, wdst_ref, bmr_ref, wih_ref, whh_ref, bih_ref, bhh_ref,
                 agg_w_ref, agg_b_ref,
                 na_w1_ref, na_b1_ref, na_w2_ref, na_b2_ref,
                 emb_ref, ni_w1_ref, ni_b1_ref, ni_w2_ref, ni_b2_ref,
                 ea_w1_ref, ea_b1_ref, ea_w2_ref, ea_b2_ref,
                 h_out_ref, hv_ref, nprob_ref, eprob_ref, nostop_ref,
                 *, B, N, ndim, sdim, latent, vocab, stop, num_layers):
    f32 = jnp.float32
    idx = scal_ref[0]                       # current node count: nodes 0..idx-1 are valid
    has_edges = scal_ref[1] > 0             # global over the whole batch (reference semantics)

    z = z_ref[...]                                                     # (B, latent)
    h_in = jnp.concatenate([h_ref[b] for b in range(B)], axis=0)       # (B*N, ndim)
    a_list = [adj_ref[b] for b in range(B)]                            # a[dst, src] per graph

    node_iota = jax.lax.broadcasted_iota(jnp.int32, (N, 1), 0)
    vmask = (node_iota < idx).astype(f32)                              # (N, 1) valid-node mask
    ones_col = jnp.ones((N, 1), f32)

    # ------------------------- GNN layers (NodeEmbUpd) -------------------------
    hcur = h_in
    for l in range(num_layers):
        wsrc = wsrc_ref[l]                  # (2*ndim, 2*ndim)  = [W_msg_src ; W_rev_src]
        wdst = wdst_ref[l]                  # (ndim, 4*ndim)    = [W_msg_dst | W_rev_dst]
        bmr = bmr_ref[l]                    # (1, 4*ndim)       = [b_msg | b_rev]
        wih = wih_ref[l]                    # (2*ndim, 3*ndim)  GRU (r|z|n)
        whh = whh_ref[l]                    # (ndim, 3*ndim)
        bih = bih_ref[l]
        bhh = bhh_ref[l]
        bm = bmr[:, :2 * ndim]
        br = bmr[:, 2 * ndim:]

        fwd_rows, rev_rows = [], []
        for b in range(B):                  # per-graph adjacency matmuls (no block-diag)
            h_b = hcur[b * N:(b + 1) * N, :]
            hb1 = jnp.concatenate([h_b, ones_col], axis=-1)            # [h | 1] -> degrees free
            fwd_rows.append(_mm(a_list[b], hb1))                       # [A @ h  | indeg ]
            rev_rows.append(jax.lax.dot_general(                       # [A^T @ h| outdeg]
                a_list[b], hb1, (((0,), (0,)), ((), ())),
                preferred_element_type=f32))
        fwd = jnp.concatenate(fwd_rows, axis=0)                        # (B*N, ndim+1)
        rev = jnp.concatenate(rev_rows, axis=0)
        indeg = fwd[:, ndim:]
        outdeg = rev[:, ndim:]
        src_cat = jnp.concatenate([fwd[:, :ndim], rev[:, :ndim]], axis=-1)   # (B*N, 2*ndim)

        # sum_{j->i} msg([h_j,h_i]) + sum_{i->t} msg_rev([h_t,h_i])  (linearity rewrite)
        hd = _mm(hcur, wdst)                                           # (B*N, 4*ndim)
        x = (_mm(src_cat, wsrc)
             + indeg * (hd[:, :2 * ndim] + bm)
             + outdeg * (hd[:, 2 * ndim:] + br))                       # aggr_out (B*N, 2*ndim)

        # GRUCell(x, h), PyTorch gate order (r, z, n)
        gi = _mm(x, wih) + bih
        gh = _mm(hcur, whh) + bhh
        r = jax.nn.sigmoid(gi[:, :ndim] + gh[:, :ndim])
        u = jax.nn.sigmoid(gi[:, ndim:2 * ndim] + gh[:, ndim:2 * ndim])
        n = jnp.tanh(gi[:, 2 * ndim:] + r * gh[:, 2 * ndim:])
        hcur = (1.0 - u) * n + u * hcur

    h_gnn = _l2norm(hcur)                                              # normalize after last layer
    h_used = jnp.where(has_edges, h_gnn, h_in)                         # skip GNN if no edges

    # ---------------- GraphAggr 'gsum', both heads in one fused matmul ----------------
    ag = _mm(h_used, agg_w_ref[...]) + agg_b_ref[...]                  # (B*N, 2*(sdim+1))
    gated_e = ag[:, :sdim] * jax.nn.sigmoid(ag[:, 2 * sdim:2 * sdim + 1])
    gated_i = ag[:, sdim:2 * sdim] * jax.nn.sigmoid(ag[:, 2 * sdim + 1:2 * sdim + 2])
    hg_rows, hgi_rows = [], []
    for b in range(B):
        sl = slice(b * N, (b + 1) * N)
        hg_rows.append(jnp.sum(gated_e[sl, :] * vmask, axis=0, keepdims=True))
        hgi_rows.append(jnp.sum(gated_i[sl, :] * vmask, axis=0, keepdims=True))
    h_g = _l2norm(jnp.concatenate(hg_rows, axis=0))                    # (B, sdim)
    h_g_init = _l2norm(jnp.concatenate(hgi_rows, axis=0))

    # ------------------------------- NodeAdd -------------------------------
    sa = _leaky(_mm(jnp.concatenate([h_g, z], axis=-1), na_w1_ref[...]) + na_b1_ref[...])
    logit = _mm(sa, na_w2_ref[...]) + na_b2_ref[...]                   # (B, vocab)
    col = jax.lax.broadcasted_iota(jnp.int32, (B, vocab), 1)
    colf = col.astype(f32)
    logit = jnp.where((col == CODE['input0']) | (col == CODE['input1']), -1e30, logit)
    mx = jnp.max(logit, axis=-1, keepdims=True)
    ex = jnp.exp(logit - mx)
    prob = ex / jnp.sum(ex, axis=-1, keepdims=True)                    # softmax
    att = jnp.min(jnp.where(logit >= mx, colf, f32(vocab)), axis=-1, keepdims=True)  # argmax
    is_last = idx >= (stop - 1)
    att = jnp.where(is_last, f32(CODE['output']), att)
    onehot = (colf == att).astype(f32)
    prob = jnp.where(is_last, onehot, prob)
    no_stop = (att != f32(CODE['output'])).astype(f32)                 # (B, 1)

    # ------------------------------- NodeInit -------------------------------
    e = _mm(onehot, emb_ref[...])                                      # embedding via one-hot matmul
    hv = _leaky(_mm(jnp.concatenate([e, h_g_init, z], axis=-1), ni_w1_ref[...]) + ni_b1_ref[...])
    hv = _l2norm(_mm(hv, ni_w2_ref[...]) + ni_b2_ref[...])             # (B, ndim)

    # ------------------------------- EdgeAdd -------------------------------
    ea_w1 = ea_w1_ref[...]
    ea_b1 = ea_b1_ref[...]
    ea_w2 = ea_w2_ref[...]                                             # (1, ndim+sdim) row
    ea_b2 = ea_b2_ref[...]                                             # (1, 1)
    for b in range(B):
        hb = h_used[b * N:(b + 1) * N, :]
        xe = jnp.concatenate([
            hb,
            jnp.broadcast_to(hv[b:b + 1, :], (N, ndim)),
            jnp.broadcast_to(h_g[b:b + 1, :], (N, sdim)),
            jnp.broadcast_to(z[b:b + 1, :], (N, latent)),
        ], axis=-1)                                                    # (N, 2*ndim+sdim+latent)
        se = _leaky(_mm(xe, ea_w1) + ea_b1)
        el = jnp.sum(se * ea_w2, axis=-1, keepdims=True) + ea_b2       # width-1 head as a reduce
        eprob_ref[b] = jax.nn.sigmoid(el) * vmask                      # masked to valid sources
        h_out_ref[b] = hb * vmask                                      # keep only valid rows

    hv_ref[...] = hv
    nprob_ref[...] = prob
    nostop_ref[...] = no_stop


def _build_step_call(p, *, B, N, ndim, sdim, latent, vocab, stop, num_layers):
    kernel = functools.partial(_step_kernel, B=B, N=N, ndim=ndim, sdim=sdim, latent=latent,
                               vocab=vocab, stop=stop, num_layers=num_layers)
    out_shape = (
        jax.ShapeDtypeStruct((B, N, ndim), jnp.float32),   # GNN-updated h (valid rows only)
        jax.ShapeDtypeStruct((B, ndim), jnp.float32),      # new node state h_v
        jax.ShapeDtypeStruct((B, vocab), jnp.float32),     # node_prob
        jax.ShapeDtypeStruct((B, N, 1), jnp.float32),      # edge_prob (masked to valid src)
        jax.ShapeDtypeStruct((B, 1), jnp.float32),         # no_stop flag
    )
    call = pl.pallas_call(
        kernel,
        out_shape=out_shape,
        in_specs=[_SMEM()] + [_VMEM()] * 25,
        out_specs=tuple(_VMEM() for _ in range(5)),
    )

    def step(scal, h, adj, z):
        return call(scal, h, adj, z,
                    p['gnn_wsrc'], p['gnn_wdst'], p['gnn_bmr'],
                    p['gnn_wih'], p['gnn_whh'], p['gnn_bih'], p['gnn_bhh'],
                    p['agg_w'], p['agg_b'],
                    p['na_w1'], p['na_b1'], p['na_w2'], p['na_b2'],
                    p['emb'], p['ni_w1'], p['ni_b1'], p['ni_w2'], p['ni_b2'],
                    p['ea_w1'], p['ea_b1'], p['ea_w2'], p['ea_b2'])

    return step


def _node_init_start(p, z):
    """NodeInit('start', ...) for input node 0 and input node 1, one fused call."""
    B = z.shape[0]
    ndim = p['emb'].shape[1]
    e0 = jnp.broadcast_to(p['emb'][CODE['input0']][None, :], (B, ndim))
    e1 = jnp.broadcast_to(p['emb'][CODE['input1']][None, :], (B, ndim))
    x = jnp.concatenate([jnp.concatenate([e0, z], axis=1),
                         jnp.concatenate([e1, z], axis=1)], axis=0)    # (2B, ndim+latent)
    y = pl.pallas_call(
        _start_mlp_kernel,
        out_shape=jax.ShapeDtypeStruct((2 * B, ndim), jnp.float32),
        in_specs=[_VMEM()] * 5,
        out_specs=_VMEM(),
    )(x, p['ns_w1'], p['ns_b1'], p['ns_w2'], p['ns_b2'])
    return y[:B], y[B:]


# ----------------------------------------------------------------------------------
# Deterministic parameter init (PyTorch-default-style uniform; synthetic, pre-fused).
# ----------------------------------------------------------------------------------
def _linear(key, din, dout):
    kw, kb = jax.random.split(key)
    bound = 1.0 / np.sqrt(din)
    w = jax.random.uniform(kw, (din, dout), jnp.float32, -bound, bound)
    b = jax.random.uniform(kb, (1, dout), jnp.float32, -bound, bound)
    return w, b


def init_params(key, *, vocab, latent, ndim, sdim, num_layers):
    keys = iter(jax.random.split(key, 64))
    p = {}

    wsrc_l, wdst_l, bmr_l, wih_l, whh_l, bih_l, bhh_l = [], [], [], [], [], [], []
    for _ in range(num_layers):
        wmsg, bmsg = _linear(next(keys), 2 * ndim, 2 * ndim)           # GNNLayer.msg
        wrev, brev = _linear(next(keys), 2 * ndim, 2 * ndim)           # GNNLayer.msg_rev
        bound = 1.0 / np.sqrt(ndim)
        k1, k2, k3, k4 = jax.random.split(next(keys), 4)
        wih = jax.random.uniform(k1, (2 * ndim, 3 * ndim), jnp.float32, -bound, bound)
        whh = jax.random.uniform(k2, (ndim, 3 * ndim), jnp.float32, -bound, bound)
        bih = jax.random.uniform(k3, (1, 3 * ndim), jnp.float32, -bound, bound)
        bhh = jax.random.uniform(k4, (1, 3 * ndim), jnp.float32, -bound, bound)
        wsrc_l.append(jnp.concatenate([wmsg[:ndim], wrev[:ndim]], axis=0))     # (2*ndim, 2*ndim)
        wdst_l.append(jnp.concatenate([wmsg[ndim:], wrev[ndim:]], axis=1))     # (ndim, 4*ndim)
        bmr_l.append(jnp.concatenate([bmsg, brev], axis=1))                    # (1, 4*ndim)
        wih_l.append(wih); whh_l.append(whh); bih_l.append(bih); bhh_l.append(bhh)
    p['gnn_wsrc'] = jnp.stack(wsrc_l)
    p['gnn_wdst'] = jnp.stack(wdst_l)
    p['gnn_bmr'] = jnp.stack(bmr_l)
    p['gnn_wih'] = jnp.stack(wih_l)
    p['gnn_whh'] = jnp.stack(whh_l)
    p['gnn_bih'] = jnp.stack(bih_l)
    p['gnn_bhh'] = jnp.stack(bhh_l)

    # GraphAggr 'gsum', both heads fused: [f_m_emb | f_m_init | g_m_emb | g_m_init]
    wm_e, bm_e = _linear(next(keys), ndim, sdim)
    wg_e, bg_e = _linear(next(keys), ndim, 1)
    wm_i, bm_i = _linear(next(keys), ndim, sdim)
    wg_i, bg_i = _linear(next(keys), ndim, 1)
    p['agg_w'] = jnp.concatenate([wm_e, wm_i, wg_e, wg_i], axis=1)     # (ndim, 2*(sdim+1))
    p['agg_b'] = jnp.concatenate([bm_e, bm_i, bg_e, bg_i], axis=1)

    p['na_w1'], p['na_b1'] = _linear(next(keys), sdim + latent, sdim)  # NodeAdd.f_an
    p['na_w2'], p['na_b2'] = _linear(next(keys), sdim, vocab)          # NodeAdd.f_an_2

    p['emb'] = jax.random.normal(next(keys), (vocab, ndim), jnp.float32)       # NodeInit.NodeInits
    p['ni_w1'], p['ni_b1'] = _linear(next(keys), ndim + sdim + latent, ndim + sdim)  # f_init
    p['ni_w2'], p['ni_b2'] = _linear(next(keys), ndim + sdim, ndim)                  # f_init_2
    p['ns_w1'], p['ns_b1'] = _linear(next(keys), ndim + latent, ndim + sdim)         # f_start
    p['ns_w2'], p['ns_b2'] = _linear(next(keys), ndim + sdim, ndim)                  # f_start_2

    p['ea_w1'], p['ea_b1'] = _linear(next(keys), 2 * ndim + sdim + latent, ndim + sdim)  # EdgeAdd.f_s_1
    we2, be2 = _linear(next(keys), ndim + sdim, 1)                                        # EdgeAdd.f_s_2
    p['ea_w2'] = we2.T          # stored as (1, ndim+sdim) row -> lane reduce instead of width-1 matmul
    p['ea_b2'] = be2            # (1, 1)
    return p


# ----------------------------------------------------------------------------------
# Generator forward: fixed-size buffers + lax.while_loop (jit-friendly, no host syncs).
# ----------------------------------------------------------------------------------
def generator_forward(params, z_label, *, stop):
    B, latent = z_label.shape
    vocab, ndim = params['emb'].shape
    sdim = params['na_w2'].shape[0]
    num_layers = params['gnn_wsrc'].shape[0]
    N = stop

    step = _build_step_call(params, B=B, N=N, ndim=ndim, sdim=sdim, latent=latent,
                            vocab=vocab, stop=stop, num_layers=num_layers)

    h0, h1 = _node_init_start(params, z_label)
    h = jnp.zeros((B, N, ndim), jnp.float32).at[:, 0, :].set(h0).at[:, 1, :].set(h1)
    adj = jnp.zeros((B, N, N), jnp.float32)                  # adj[b, dst, src]
    node_probs = jnp.zeros((B, N, vocab), jnp.float32)
    node_probs = node_probs.at[:, 2:, CODE['output']].set(1.0)   # padding rows decode to 'output'
    node_probs = node_probs.at[:, 0, CODE['input0']].set(1.0)
    node_probs = node_probs.at[:, 1, CODE['input1']].set(1.0)
    edge_probs = jnp.zeros((B, N, N), jnp.float32)
    no_stops = jnp.ones((B,), jnp.float32)
    state = (h, adj, node_probs, edge_probs, no_stops, jnp.array(2, jnp.int32))

    def cond_fn(state):
        return jnp.any(state[4] > 0.0)                       # num_stops < batch_size

    def body_fn(state):
        h, adj, node_probs, edge_probs, no_stops, idx = state
        has_edges = (jnp.sum(adj) > 0.0).astype(jnp.int32)   # edge_index.size(1) == 0 check
        scal = jnp.stack([idx, has_edges])
        h_keep, h_v, nprob, eprob, no_stop = step(scal, h, adj, z_label)
        eprob2 = eprob[:, :, 0]                              # (B, N)
        epred = (eprob2 > 0.5).astype(jnp.float32)
        h = jax.lax.dynamic_update_slice(h_keep, h_v[:, None, :], (0, idx, 0))
        adj = jax.lax.dynamic_update_slice(adj, epred[:, None, :], (0, idx, 0))
        node_probs = jax.lax.dynamic_update_slice(node_probs, nprob[:, None, :], (0, idx, 0))
        edge_probs = jax.lax.dynamic_update_slice(edge_probs, eprob2[:, None, :], (0, idx, 0))
        no_stops = no_stops * no_stop[:, 0]
        return (h, adj, node_probs, edge_probs, no_stops, idx + jnp.int32(1))

    _, _, node_probs, edge_probs, _, _ = jax.lax.while_loop(cond_fn, body_fn, state)

    # get_graphs equivalent: decode to discrete graphs padded to `stop`.
    node_atts = jnp.argmax(node_probs, axis=-1)              # (B, stop)
    adjacency = (edge_probs > 0.5).astype(jnp.float32)       # (B, stop, stop)
    return node_atts, adjacency


if __name__ == "__main__":
    VOCAB = 6        # opt.VOCABSIZE  (input0=0, input1=1, output=2, + 3 op types)
    LATENT = 16      # z_label_dim
    NDIM = 32        # opt.GEMBSIZE
    SDIM = 16        # opt.GHIDDENSIZE
    NUM_LAYERS = 2   # opt.GNUMLAYERS
    STOP = 6         # opt.MAXSTEP
    BATCH = 2

    key = jax.random.PRNGKey(0)
    pkey, zkey = jax.random.split(key)
    params = init_params(pkey, vocab=VOCAB, latent=LATENT, ndim=NDIM, sdim=SDIM,
                         num_layers=NUM_LAYERS)
    z_label = jax.random.normal(zkey, (BATCH, LATENT), jnp.float32)

    generate = jax.jit(functools.partial(generator_forward, stop=STOP))
    node_atts, adjacency = generate(params, z_label)
    jax.block_until_ready((node_atts, adjacency))
    print("KERNEL_OK")
</pallas_src>

<mosaic_0001>
module attributes {stable_mosaic.version = 11 : i64} {
  func.func @_start_mlp_kernel(%arg0: memref<4x48xf32, #tpu.memory_space<vmem>>, %arg1: memref<48x48xf32, #tpu.memory_space<vmem>>, %arg2: memref<1x48xf32, #tpu.memory_space<vmem>>, %arg3: memref<48x32xf32, #tpu.memory_space<vmem>>, %arg4: memref<1x32xf32, #tpu.memory_space<vmem>>, %arg5: memref<4x32xf32, #tpu.memory_space<vmem>>) attributes {dimension_semantics = [], scalar_prefetch = 0 : i64, scratch_operands = 0 : i64, tpu.core_type = #tpu.core_type<tc>} {
    %c0 = arith.constant 0 : index
    %c0_0 = arith.constant 0 : index
    %0 = vector.load %arg0[%c0, %c0_0] : memref<4x48xf32, #tpu.memory_space<vmem>>, vector<4x48xf32>
    %c0_1 = arith.constant 0 : index
    %c0_2 = arith.constant 0 : index
    %1 = vector.load %arg1[%c0_1, %c0_2] : memref<48x48xf32, #tpu.memory_space<vmem>>, vector<48x48xf32>
    %cst = arith.constant dense<0.000000e+00> : vector<4x48xf32>
    %2 = tpu.matmul %0, %1, %cst {dimension_numbers = #tpu.dot_dimension_numbers<[1], [0], [0], [1], [0, 0, 1, 1], [], []>} : vector<4x48xf32>, vector<48x48xf32>, vector<4x48xf32> -> vector<4x48xf32>
    %c0_3 = arith.constant 0 : index
    %c0_4 = arith.constant 0 : index
    %3 = vector.load %arg2[%c0_3, %c0_4] : memref<1x48xf32, #tpu.memory_space<vmem>>, vector<1x48xf32>
    %4 = vector.broadcast %3 : vector<1x48xf32> to vector<4x48xf32>
    %5 = arith.addf %2, %4 : vector<4x48xf32>
    %cst_5 = arith.constant 0.000000e+00 : f32
    %6 = vector.broadcast %cst_5 : f32 to vector<4x48xf32>
    %7 = arith.cmpf oge, %5, %6 : vector<4x48xf32>
    %cst_6 = arith.constant 2.000000e-01 : f32
    %8 = vector.broadcast %cst_6 : f32 to vector<4x48xf32>
    %9 = arith.mulf %8, %5 : vector<4x48xf32>
    %10 = arith.select %7, %5, %9 : vector<4x48xi1>, vector<4x48xf32>
    %c0_7 = arith.constant 0 : index
    %c0_8 = arith.constant 0 : index
    %11 = vector.load %arg3[%c0_7, %c0_8] : memref<48x32xf32, #tpu.memory_space<vmem>>, vector<48x32xf32>
    %cst_9 = arith.constant dense<0.000000e+00> : vector<4x32xf32>
    %12 = tpu.matmul %10, %11, %cst_9 {dimension_numbers = #tpu.dot_dimension_numbers<[1], [0], [0], [1], [0, 0, 1, 1], [], []>} : vector<4x48xf32>, vector<48x32xf32>, vector<4x32xf32> -> vector<4x32xf32>
    %c0_10 = arith.constant 0 : index
    %c0_11 = arith.constant 0 : index
    %13 = vector.load %arg4[%c0_10, %c0_11] : memref<1x32xf32, #tpu.memory_space<vmem>>, vector<1x32xf32>
    %14 = vector.broadcast %13 : vector<1x32xf32> to vector<4x32xf32>
    %15 = arith.addf %12, %14 : vector<4x32xf32>
    %c0_12 = arith.constant 0 : index
    %c0_13 = arith.constant 0 : index
    %16 = vector.load %arg5[%c0_12, %c0_13] : memref<4x32xf32, #tpu.memory_space<vmem>>, vector<4x32xf32>
    tpu.vector_store %arg5[%c0_12, %c0_13], %15 {strides = array<i32>} : memref<4x32xf32, #tpu.memory_space<vmem>>, vector<4x32xf32>,
    return
  }
}

module attributes {stable_mosaic.version = 11 : i64} {
  func.func @_step_kernel(%arg0: memref<2xi32, #tpu.memory_space<smem>>, %arg1: memref<2x6x32xf32, #tpu.memory_space<vmem>>, %arg2: memref<2x6x6xf32, #tpu.memory_space<vmem>>, %arg3: memref<2x16xf32, #tpu.memory_space<vmem>>, %arg4: memref<2x64x64xf32, #tpu.memory_space<vmem>>, %arg5: memref<2x32x128xf32, #tpu.memory_space<vmem>>, %arg6: memref<2x1x128xf32, #tpu.memory_space<vmem>>, %arg7: memref<2x64x96xf32, #tpu.memory_space<vmem>>, %arg8: memref<2x32x96xf32, #tpu.memory_space<vmem>>, %arg9: memref<2x1x96xf32, #tpu.memory_space<vmem>>, %arg10: memref<2x1x96xf32, #tpu.memory_space<vmem>>, %arg11: memref<32x34xf32, #tpu.memory_space<vmem>>, %arg12: memref<1x34xf32, #tpu.memory_space<vmem>>, %arg13: memref<32x16xf32, #tpu.memory_space<vmem>>, %arg14: memref<1x16xf32, #tpu.memory_space<vmem>>, %arg15: memref<16x6xf32, #tpu.memory_space<vmem>>, %arg16: memref<1x6xf32, #tpu.memory_space<vmem>>, %arg17: memref<6x32xf32, #tpu.memory_space<vmem>>, %arg18: memref<64x48xf32, #tpu.memory_space<vmem>>, %arg19: memref<1x48xf32, #tpu.memory_space<vmem>>, %arg20: memref<48x32xf32, #tpu.memory_space<vmem>>, %arg21: memref<1x32xf32, #tpu.memory_space<vmem>>, %arg22: memref<96x48xf32, #tpu.memory_space<vmem>>, %arg23: memref<1x48xf32, #tpu.memory_space<vmem>>, %arg24: memref<1x48xf32, #tpu.memory_space<vmem>>, %arg25: memref<1x1xf32, #tpu.memory_space<vmem>>, %arg26: memref<2x6x32xf32, #tpu.memory_space<vmem>>, %arg27: memref<2x32xf32, #tpu.memory_space<vmem>>, %arg28: memref<2x6xf32, #tpu.memory_space<vmem>>, %arg29: memref<2x6x1xf32, #tpu.memory_space<vmem>>, %arg30: memref<2x1xf32, #tpu.memory_space<vmem>>) attributes {dimension_semantics = [], scalar_prefetch = 0 : i64, scratch_operands = 0 : i64, tpu.core_type = #tpu.core_type<tc>} {
    %c0 = arith.constant 0 : index
    %0 = memref.load %arg0[%c0] : memref<2xi32, #tpu.memory_space<smem>>
    %c1 = arith.constant 1 : index
    %1 = memref.load %arg0[%c1] : memref<2xi32, #tpu.memory_space<smem>>
    %c0_i32 = arith.constant 0 : i32
    %2 = arith.cmpi sgt, %1, %c0_i32 : i32
    %c0_0 = arith.constant 0 : index
    %c0_1 = arith.constant 0 : index
    %3 = vector.load %arg3[%c0_0, %c0_1] : memref<2x16xf32, #tpu.memory_space<vmem>>, vector<2x16xf32>
    %c0_2 = arith.constant 0 : index
    %c0_3 = arith.constant 0 : index
    %c0_4 = arith.constant 0 : index
    %4 = vector.load %arg1[%c0_2, %c0_3, %c0_4] : memref<2x6x32xf32, #tpu.memory_space<vmem>>, vector<1x6x32xf32>
    %5 = vector.shape_cast %4 : vector<1x6x32xf32> to vector<6x32xf32>
    %c1_5 = arith.constant 1 : index
    %c0_6 = arith.constant 0 : index
    %c0_7 = arith.constant 0 : index
    %6 = vector.load %arg1[%c1_5, %c0_6, %c0_7] : memref<2x6x32xf32, #tpu.memory_space<vmem>>, vector<1x6x32xf32>
    %7 = vector.shape_cast %6 : vector<1x6x32xf32> to vector<6x32xf32>
    %8 = tpu.concatenate %5, %7 in 0 : vector<6x32xf32>, vector<6x32xf32> -> vector<12x32xf32>
    %c0_8 = arith.constant 0 : index
    %c0_9 = arith.constant 0 : index
    %c0_10 = arith.constant 0 : index
    %9 = vector.load %arg2[%c0_8, %c0_9, %c0_10] : memref<2x6x6xf32, #tpu.memory_space<vmem>>, vector<1x6x6xf32>
    %10 = vector.shape_cast %9 : vector<1x6x6xf32> to vector<6x6xf32>
    %c1_11 = arith.constant 1 : index
    %c0_12 = arith.constant 0 : index
    %c0_13 = arith.constant 0 : index
    %11 = vector.load %arg2[%c1_11, %c0_12, %c0_13] : memref<2x6x6xf32, #tpu.memory_space<vmem>>, vector<1x6x6xf32>
    %12 = vector.shape_cast %11 : vector<1x6x6xf32> to vector<6x6xf32>
    %13 = tpu.iota {dimensions = array<i32: 0>} : vector<6x1xi32>
    %14 = vector.broadcast %0 : i32 to vector<6x1xi32>
    %15 = arith.cmpi slt, %13, %14 : vector<6x1xi32>
    %16 = arith.extui %15 : vector<6x1xi1> to vector<6x1xi32>
    %17 = arith.sitofp %16 : vector<6x1xi32> to vector<6x1xf32>
    %cst = arith.constant 1.000000e+00 : f32
    %18 = vector.broadcast %cst : f32 to vector<6x1xf32>
    %c0_14 = arith.constant 0 : index
    %c0_15 = arith.constant 0 : index
    %c0_16 = arith.constant 0 : index
    %19 = vector.load %arg4[%c0_14, %c0_15, %c0_16] : memref<2x64x64xf32, #tpu.memory_space<vmem>>, vector<1x64x64xf32>
    %20 = vector.shape_cast %19 : vector<1x64x64xf32> to vector<64x64xf32>
    %c0_17 = arith.constant 0 : index
    %c0_18 = arith.constant 0 : index
    %c0_19 = arith.constant 0 : index
    %21 = vector.load %arg5[%c0_17, %c0_18, %c0_19] : memref<2x32x128xf32, #tpu.memory_space<vmem>>, vector<1x32x128xf32>
    %22 = vector.shape_cast %21 : vector<1x32x128xf32> to vector<32x128xf32>
    %c0_20 = arith.constant 0 : index
    %c0_21 = arith.constant 0 : index
    %c0_22 = arith.constant 0 : index
    %23 = vector.load %arg6[%c0_20, %c0_21, %c0_22] : memref<2x1x128xf32, #tpu.memory_space<vmem>>, vector<1x1x128xf32>
    %24 = vector.shape_cast %23 : vector<1x1x128xf32> to vector<1x128xf32>
    %c0_23 = arith.constant 0 : index
    %c0_24 = arith.constant 0 : index
    %c0_25 = arith.constant 0 : index
    %25 = vector.load %arg7[%c0_23, %c0_24, %c0_25] : memref<2x64x96xf32, #tpu.memory_space<vmem>>, vector<1x64x96xf32>
    %26 = vector.shape_cast %25 : vector<1x64x96xf32> to vector<64x96xf32>
    %c0_26 = arith.constant 0 : index
    %c0_27 = arith.constant 0 : index
    %c0_28 = arith.constant 0 : index
    %27 = vector.load %arg8[%c0_26, %c0_27, %c0_28] : memref<2x32x96xf32, #tpu.memory_space<vmem>>, vector<1x32x96xf32>
    %28 = vector.shape_cast %27 : vector<1x32x96xf32> to vector<32x96xf32>
    %c0_29 = arith.constant 0 : index
    %c0_30 = arith.constant 0 : index
    %c0_31 = arith.constant 0 : index
    %29 = vector.load %arg9[%c0_29, %c0_30, %c0_31] : memref<2x1x96xf32, #tpu.memory_space<vmem>>, vector<1x1x96xf32>
    %30 = vector.shape_cast %29 : vector<1x1x96xf32> to vector<1x96xf32>
    %c0_32 = arith.constant 0 : index
    %c0_33 = arith.constant 0 : index
    %c0_34 = arith.constant 0 : index
    %31 = vector.load %arg10[%c0_32, %c0_33, %c0_34] : memref<2x1x96xf32, #tpu.memory_space<vmem>>, vector<1x1x96xf32>
    %32 = vector.shape_cast %31 : vector<1x1x96xf32> to vector<1x96xf32>
    %33 = vector.extract_strided_slice %24 {offsets = [0, 0], sizes = [1, 64], strides = [1, 1]} : vector<1x128xf32> to vector<1x64xf32>
    %34 = vector.extract_strided_slice %24 {offsets = [0, 64], sizes = [1, 64], strides = [1, 1]} : vector<1x128xf32> to vector<1x64xf32>
    %35 = vector.extract_strided_slice %8 {offsets = [0, 0], sizes = [6, 32], strides = [1, 1]} : vector<12x32xf32> to vector<6x32xf32>
    %36 = tpu.concatenate %35, %18 in 1 : vector<6x32xf32>, vector<6x1xf32> -> vector<6x33xf32>
    %cst_35 = arith.constant dense<0.000000e+00> : vector<6x33xf32>
    %37 = tpu.matmul %10, %36, %cst_35 {dimension_numbers = #tpu.dot_dimension_numbers<[1], [0], [0], [1], [0, 0, 1, 1], [], []>} : vector<6x6xf32>, vector<6x33xf32>, vector<6x33xf32> -> vector<6x33xf32>
    %cst_36 = arith.constant dense<0.000000e+00> : vector<6x33xf32>
    %38 = tpu.matmul %10, %36, %cst_36 {dimension_numbers = #tpu.dot_dimension_numbers<[0], [0], [1], [1], [0, 1, 1, 1], [], []>} : vector<6x6xf32>, vector<6x33xf32>, vector<6x33xf32> -> vector<6x33xf32>
    %39 = vector.extract_strided_slice %8 {offsets = [6, 0], sizes = [6, 32], strides = [1, 1]} : vector<12x32xf32> to vector<6x32xf32>
    %40 = tpu.concatenate %39, %18 in 1 : vector<6x32xf32>, vector<6x1xf32> -> vector<6x33xf32>
    %cst_37 = arith.constant dense<0.000000e+00> : vector<6x33xf32>
    %41 = tpu.matmul %12, %40, %cst_37 {dimension_numbers = #tpu.dot_dimension_numbers<[1], [0], [0], [1], [0, 0, 1, 1], [], []>} : vector<6x6xf32>, vector<6x33xf32>, vector<6x33xf32> -> vector<6x33xf32>
    %cst_38 = arith.constant dense<0.000000e+00> : vector<6x33xf32>
    %42 = tpu.matmul %12, %40, %cst_38 {dimension_numbers = #tpu.dot_dimension_numbers<[0], [0], [1], [1], [0, 1, 1, 1], [], []>} : vector<6x6xf32>, vector<6x33xf32>, vector<6x33xf32> -> vector<6x33xf32>
    %43 = tpu.concatenate %37, %41 in 0 : vector<6x33xf32>, vector<6x33xf32> -> vector<12x33xf32>
    %44 = tpu.concatenate %38, %42 in 0 : vector<6x33xf32>, vector<6x33xf32> -> vector<12x33xf32>
    %45 = vector.extract_strided_slice %43 {offsets = [0, 32], sizes = [12, 1], strides = [1, 1]} : vector<12x33xf32> to vector<12x1xf32>
    %46 = vector.extract_strided_slice %44 {offsets = [0, 32], sizes = [12, 1], strides = [1, 1]} : vector<12x33xf32> to vector<12x1xf32>
    %47 = vector.extract_strided_slice %43 {offsets = [0, 0], sizes = [12, 32], strides = [1, 1]} : vector<12x33xf32> to vector<12x32xf32>
    %48 = vector.extract_strided_slice %44 {offsets = [0, 0], sizes = [12, 32], strides = [1, 1]} : vector<12x33xf32> to vector<12x32xf32>
    %49 = tpu.concatenate %47, %48 in 1 : vector<12x32xf32>, vector<12x32xf32> -> vector<12x64xf32>
    %cst_39 = arith.constant dense<0.000000e+00> : vector<12x128xf32>
    %50 = tpu.matmul %8, %22, %cst_39 {dimension_numbers = #tpu.dot_dimension_numbers<[1], [0], [0], [1], [0, 0, 1, 1], [], []>} : vector<12x32xf32>, vector<32x128xf32>, vector<12x128xf32> -> vector<12x128xf32>
    %cst_40 = arith.constant dense<0.000000e+00> : vector<12x64xf32>
    %51 = tpu.matmul %49, %20, %cst_40 {dimension_numbers = #tpu.dot_dimension_numbers<[1], [0], [0], [1], [0, 0, 1, 1], [], []>} : vector<12x64xf32>, vector<64x64xf32>, vector<12x64xf32> -> vector<12x64xf32>
    %52 = vector.extract_strided_slice %50 {offsets = [0, 0], sizes = [12, 64], strides = [1, 1]} : vector<12x128xf32> to vector<12x64xf32>
    %53 = vector.broadcast %33 : vector<1x64xf32> to vector<12x64xf32>
    %54 = arith.addf %52, %53 : vector<12x64xf32>
    %55 = vector.broadcast %45 : vector<12x1xf32> to vector<12x64xf32>
    %56 = arith.mulf %55, %54 : vector<12x64xf32>
    %57 = arith.addf %51, %56 : vector<12x64xf32>
    %58 = vector.extract_strided_slice %50 {offsets = [0, 64], sizes = [12, 64], strides = [1, 1]} : vector<12x128xf32> to vector<12x64xf32>
    %59 = vector.broadcast %34 : vector<1x64xf32> to vector<12x64xf32>
    %60 = arith.addf %58, %59 : vector<12x64xf32>
    %61 = vector.broadcast %46 : vector<12x1xf32> to vector<12x64xf32>
    %62 = arith.mulf %61, %60 : vector<12x64xf32>
    %63 = arith.addf %57, %62 : vector<12x64xf32>
    %cst_41 = arith.constant dense<0.000000e+00> : vector<12x96xf32>
    %64 = tpu.matmul %63, %26, %cst_41 {dimension_numbers = #tpu.dot_dimension_numbers<[1], [0], [0], [1], [0, 0, 1, 1], [], []>} : vector<12x64xf32>, vector<64x96xf32>, vector<12x96xf32> -> vector<12x96xf32>
    %65 = vector.broadcast %30 : vector<1x96xf32> to vector<12x96xf32>
    %66 = arith.addf %64, %65 : vector<12x96xf32>
    %cst_42 = arith.constant dense<0.000000e+00> : vector<12x96xf32>
    %67 = tpu.matmul %8, %28, %cst_42 {dimension_numbers = #tpu.dot_dimension_numbers<[1], [0], [0], [1], [0, 0, 1, 1], [], []>} : vector<12x32xf32>, vector<32x96xf32>, vector<12x96xf32> -> vector<12x96xf32>
    %68 = vector.broadcast %32 : vector<1x96xf32> to vector<12x96xf32>
    %69 = arith.addf %67, %68 : vector<12x96xf32>
    %70 = vector.extract_strided_slice %66 {offsets = [0, 0], sizes = [12, 32], strides = [1, 1]} : vector<12x96xf32> to vector<12x32xf32>
    %71 = vector.extract_strided_slice %69 {offsets = [0, 0], sizes = [12, 32], strides = [1, 1]} : vector<12x96xf32> to vector<12x32xf32>
    %72 = arith.addf %70, %71 : vector<12x32xf32>
    %73 = arith.negf %72 : vector<12x32xf32>
    %74 = math.exp %73 : vector<12x32xf32>
    %cst_43 = arith.constant 1.000000e+00 : f32
    %75 = vector.broadcast %cst_43 : f32 to vector<12x32xf32>
    %76 = arith.addf %75, %74 : vector<12x32xf32>
    %77 = arith.divf %75, %76 : vector<12x32xf32>
    %78 = vector.extract_strided_slice %66 {offsets = [0, 32], sizes = [12, 32], strides = [1, 1]} : vector<12x96xf32> to vector<12x32xf32>
    %79 = vector.extract_strided_slice %69 {offsets = [0, 32], sizes = [12, 32], strides = [1, 1]} : vector<12x96xf32> to vector<12x32xf32>
    %80 = arith.addf %78, %79 : vector<12x32xf32>
    %81 = arith.negf %80 : vector<12x32xf32>
    %82 = math.exp %81 : vector<12x32xf32>
    %cst_44 = arith.constant 1.000000e+00 : f32
    %83 = vector.broadcast %cst_44 : f32 to vector<12x32xf32>
    %84 = arith.addf %83, %82 : vector<12x32xf32>
    %85 = arith.divf %83, %84 : vector<12x32xf32>
    %86 = vector.extract_strided_slice %66 {offsets = [0, 64], sizes = [12, 32], strides = [1, 1]} : vector<12x96xf32> to vector<12x32xf32>
    %87 = vector.extract_strided_slice %69 {offsets = [0, 64], sizes = [12, 32], strides = [1, 1]} : vector<12x96xf32> to vector<12x32xf32>
    %88 = arith.mulf %77, %87 : vector<12x32xf32>
    %89 = arith.addf %86, %88 : vector<12x32xf32>
    %90 = math.tanh %89 : vector<12x32xf32>
    %cst_45 = arith.constant 1.000000e+00 : f32
    %91 = vector.broadcast %cst_45 : f32 to vector<12x32xf32>
    %92 = arith.subf %91, %85 : vector<12x32xf32>
    %93 = arith.mulf %92, %90 : vector<12x32xf32>
    %94 = arith.mulf %85, %8 : vector<12x32xf32>
    %95 = arith.addf %93, %94 : vector<12x32xf32>
    %c1_46 = arith.constant 1 : index
    %c0_47 = arith.constant 0 : index
    %c0_48 = arith.constant 0 : index
    %96 = vector.load %arg4[%c1_46, %c0_47, %c0_48] : memref<2x64x64xf32, #tpu.memory_space<vmem>>, vector<1x64x64xf32>
    %97 = vector.shape_cast %96 : vector<1x64x64xf32> to vector<64x64xf32>
    %c1_49 = arith.constant 1 : index
    %c0_50 = arith.constant 0 : index
    %c0_51 = arith.constant 0 : index
    %98 = vector.load %arg5[%c1_49, %c0_50, %c0_51] : memref<2x32x128xf32, #tpu.memory_space<vmem>>, vector<1x32x128xf32>
    %99 = vector.shape_cast %98 : vector<1x32x128xf32> to vector<32x128xf32>
    %c1_52 = arith.constant 1 : index
    %c0_53 = arith.constant 0 : index
    %c0_54 = arith.constant 0 : index
    %100 = vector.load %arg6[%c1_52, %c0_53, %c0_54] : memref<2x1x128xf32, #tpu.memory_space<vmem>>, vector<1x1x128xf32>
    %101 = vector.shape_cast %100 : vector<1x1x128xf32> to vector<1x128xf32>
    %c1_55 = arith.constant 1 : index
    %c0_56 = arith.constant 0 : index
    %c0_57 = arith.constant 0 : index
    %102 = vector.load %arg7[%c1_55, %c0_56, %c0_57] : memref<2x64x96xf32, #tpu.memory_space<vmem>>, vector<1x64x96xf32>
    %103 = vector.shape_cast %102 : vector<1x64x96xf32> to vector<64x96xf32>
    %c1_58 = arith.constant 1 : index
    %c0_59 = arith.constant 0 : index
    %c0_60 = arith.constant 0 : index
    %104 = vector.load %arg8[%c1_58, %c0_59, %c0_60] : memref<2x32x96xf32, #tpu.memory_space<vmem>>, vector<1x32x96xf32>
    %105 = vector.shape_cast %104 : vector<1x32x96xf32> to vector<32x96xf32>
    %c1_61 = arith.constant 1 : index
    %c0_62 = arith.constant 0 : index
    %c0_63 = arith.constant 0 : index
    %106 = vector.load %arg9[%c1_61, %c0_62, %c0_63] : memref<2x1x96xf32, #tpu.memory_space<vmem>>, vector<1x1x96xf32>
    %107 = vector.shape_cast %106 : vector<1x1x96xf32> to vector<1x96xf32>
    %c1_64 = arith.constant 1 : index
    %c0_65 = arith.constant 0 : index
    %c0_66 = arith.constant 0 : index
    %108 = vector.load %arg10[%c1_64, %c0_65, %c0_66] : memref<2x1x96xf32, #tpu.memory_space<vmem>>, vector<1x1x96xf32>
    %109 = vector.shape_cast %108 : vector<1x1x96xf32> to vector<1x96xf32>
    %110 = vector.extract_strided_slice %101 {offsets = [0, 0], sizes = [1, 64], strides = [1, 1]} : vector<1x128xf32> to vector<1x64xf32>
    %111 = vector.extract_strided_slice %101 {offsets = [0, 64], sizes = [1, 64], strides = [1, 1]} : vector<1x128xf32> to vector<1x64xf32>
    %112 = vector.extract_strided_slice %95 {offsets = [0, 0], sizes = [6, 32], strides = [1, 1]} : vector<12x32xf32> to vector<6x32xf32>
    %113 = tpu.concatenate %112, %18 in 1 : vector<6x32xf32>, vector<6x1xf32> -> vector<6x33xf32>
    %cst_67 = arith.constant dense<0.000000e+00> : vector<6x33xf32>
    %114 = tpu.matmul %10, %113, %cst_67 {dimension_numbers = #tpu.dot_dimension_numbers<[1], [0], [0], [1], [0, 0, 1, 1], [], []>} : vector<6x6xf32>, vector<6x33xf32>, vector<6x33xf32> -> vector<6x33xf32>
    %cst_68 = arith.constant dense<0.000000e+00> : vector<6x33xf32>
    %115 = tpu.matmul %10, %113, %cst_68 {dimension_numbers = #tpu.dot_dimension_numbers<[0], [0], [1], [1], [0, 1, 1, 1], [], []>} : vector<6x6xf32>, vector<6x33xf32>, vector<6x33xf32> -> vector<6x33xf32>
    %116 = vector.extract_strided_slice %95 {offsets = [6, 0], sizes = [6, 32], strides = [1, 1]} : vector<12x32xf32> to vector<6x32xf32>
    %117 = tpu.concatenate %116, %18 in 1 : vector<6x32xf32>, vector<6x1xf32> -> vector<6x33xf32>
    %cst_69 = arith.constant dense<0.000000e+00> : vector<6x33xf32>
    %118 = tpu.matmul %12, %117, %cst_69 {dimension_numbers = #tpu.dot_dimension_numbers<[1], [0], [0], [1], [0, 0, 1, 1], [], []>} : vector<6x6xf32>, vector<6x33xf32>, vector<6x33xf32> -> vector<6x33xf32>
    %cst_70 = arith.constant dense<0.000000e+00> : vector<6x33xf32>
    %119 = tpu.matmul %12, %117, %cst_70 {dimension_numbers = #tpu.dot_dimension_numbers<[0], [0], [1], [1], [0, 1, 1, 1], [], []>} : vector<6x6xf32>, vector<6x33xf32>, vector<6x33xf32> -> vector<6x33xf32>
    %120 = tpu.concatenate %114, %118 in 0 : vector<6x33xf32>, vector<6x33xf32> -> vector<12x33xf32>
    %121 = tpu.concatenate %115, %119 in 0 : vector<6x33xf32>, vector<6x33xf32> -> vector<12x33xf32>
    %122 = vector.extract_strided_slice %120 {offsets = [0, 32], sizes = [12, 1], strides = [1, 1]} : vector<12x33xf32> to vector<12x1xf32>
    %123 = vector.extract_strided_slice %121 {offsets = [0, 32], sizes = [12, 1], strides = [1, 1]} : vector<12x33xf32> to vector<12x1xf32>
    %124 = vector.extract_strided_slice %120 {offsets = [0, 0], sizes = [12, 32], strides = [1, 1]} : vector<12x33xf32> to vector<12x32xf32>
    %125 = vector.extract_strided_slice %121 {offsets = [0, 0], sizes = [12, 32], strides = [1, 1]} : vector<12x33xf32> to vector<12x32xf32>
    %126 = tpu.concatenate %124, %125 in 1 : vector<12x32xf32>, vector<12x32xf32> -> vector<12x64xf32>
    %cst_71 = arith.constant dense<0.000000e+00> : vector<12x128xf32>
    %127 = tpu.matmul %95, %99, %cst_71 {dimension_numbers = #tpu.dot_dimension_numbers<[1], [0], [0], [1], [0, 0, 1, 1], [], []>} : vector<12x32xf32>, vector<32x128xf32>, vector<12x128xf32> -> vector<12x128xf32>
    %cst_72 = arith.constant dense<0.000000e+00> : vector<12x64xf32>
    %128 = tpu.matmul %126, %97, %cst_72 {dimension_numbers = #tpu.dot_dimension_numbers<[1], [0], [0], [1], [0, 0, 1, 1], [], []>} : vector<12x64xf32>, vector<64x64xf32>, vector<12x64xf32> -> vector<12x64xf32>
    %129 = vector.extract_strided_slice %127 {offsets = [0, 0], sizes = [12, 64], strides = [1, 1]} : vector<12x128xf32> to vector<12x64xf32>
    %130 = vector.broadcast %110 : vector<1x64xf32> to vector<12x64xf32>
    %131 = arith.addf %129, %130 : vector<12x64xf32>
    %132 = vector.broadcast %122 : vector<12x1xf32> to vector<12x64xf32>
    %133 = arith.mulf %132, %131 : vector<12x64xf32>
    %134 = arith.addf %128, %133 : vector<12x64xf32>
    %135 = vector.extract_strided_slice %127 {offsets = [0, 64], sizes = [12, 64], strides = [1, 1]} : vector<12x128xf32> to vector<12x64xf32>
    %136 = vector.broadcast %111 : vector<1x64xf32> to vector<12x64xf32>
    %137 = arith.addf %135, %136 : vector<12x64xf32>
    %138 = vector.broadcast %123 : vector<12x1xf32> to vector<12x64xf32>
    %139 = arith.mulf %138, %137 : vector<12x64xf32>
    %140 = arith.addf %134, %139 : vector<12x64xf32>
    %cst_73 = arith.constant dense<0.000000e+00> : vector<12x96xf32>
    %141 = tpu.matmul %140, %103, %cst_73 {dimension_numbers = #tpu.dot_dimension_numbers<[1], [0], [0], [1], [0, 0, 1, 1], [], []>} : vector<12x64xf32>, vector<64x96xf32>, vector<12x96xf32> -> vector<12x96xf32>
    %142 = vector.broadcast %107 : vector<1x96xf32> to vector<12x96xf32>
    %143 = arith.addf %141, %142 : vector<12x96xf32>
    %cst_74 = arith.constant dense<0.000000e+00> : vector<12x96xf32>
    %144 = tpu.matmul %95, %105, %cst_74 {dimension_numbers = #tpu.dot_dimension_numbers<[1], [0], [0], [1], [0, 0, 1, 1], [], []>} : vector<12x32xf32>, vector<32x96xf32>, vector<12x96xf32> -> vector<12x96xf32>
    %145 = vector.broadcast %109 : vector<1x96xf32> to vector<12x96xf32>
    %146 = arith.addf %144, %145 : vector<12x96xf32>
    %147 = vector.extract_strided_slice %143 {offsets = [0, 0], sizes = [12, 32], strides = [1, 1]} : vector<12x96xf32> to vector<12x32xf32>
    %148 = vector.extract_strided_slice %146 {offsets = [0, 0], sizes = [12, 32], strides = [1, 1]} : vector<12x96xf32> to vector<12x32xf32>
    %149 = arith.addf %147, %148 : vector<12x32xf32>
    %150 = arith.negf %149 : vector<12x32xf32>
    %151 = math.exp %150 : vector<12x32xf32>
    %cst_75 = arith.constant 1.000000e+00 : f32
    %152 = vector.broadcast %cst_75 : f32 to vector<12x32xf32>
    %153 = arith.addf %152, %151 : vector<12x32xf32>
    %154 = arith.divf %152, %153 : vector<12x32xf32>
    %155 = vector.extract_strided_slice %143 {offsets = [0, 32], sizes = [12, 32], strides = [1, 1]} : vector<12x96xf32> to vector<12x32xf32>
    %156 = vector.extract_strided_slice %146 {offsets = [0, 32], sizes = [12, 32], strides = [1, 1]} : vector<12x96xf32> to vector<12x32xf32>
    %157 = arith.addf %155, %156 : vector<12x32xf32>
    %158 = arith.negf %157 : vector<12x32xf32>
    %159 = math.exp %158 : vector<12x32xf32>
    %cst_76 = arith.constant 1.000000e+00 : f32
    %160 = vector.broadcast %cst_76 : f32 to vector<12x32xf32>
    %161 = arith.addf %160, %159 : vector<12x32xf32>
    %162 = arith.divf %160, %161 : vector<12x32xf32>
    %163 = vector.extract_strided_slice %143 {offsets = [0, 64], sizes = [12, 32], strides = [1, 1]} : vector<12x96xf32> to vector<12x32xf32>
    %164 = vector.extract_strided_slice %146 {offsets = [0, 64], sizes = [12, 32], strides = [1, 1]} : vector<12x96xf32> to vector<12x32xf32>
    %165 = arith.mulf %154, %164 : vector<12x32xf32>
    %166 = arith.addf %163, %165 : vector<12x32xf32>
    %167 = math.tanh %166 : vector<12x32xf32>
    %cst_77 = arith.constant 1.000000e+00 : f32
    %168 = vector.broadcast %cst_77 : f32 to vector<12x32xf32>
    %169 = arith.subf %168, %162 : vector<12x32xf32>
    %170 = arith.mulf %169, %167 : vector<12x32xf32>
    %171 = arith.mulf %162, %95 : vector<12x32xf32>
    %172 = arith.addf %170, %171 : vector<12x32xf32>
    %173 = arith.mulf %172, %172 : vector<12x32xf32>
    %cst_78 = arith.constant dense<0.000000e+00> : vector<12xf32>
    %174 = vector.multi_reduction <add>, %173, %cst_78 [1] : vector<12x32xf32> to vector<12xf32>
    %175 = vector.shape_cast %174 : vector<12xf32> to vector<12x1xf32>
    %cst_79 = arith.constant 1.000000e-24 : f32
    %176 = vector.broadcast %cst_79 : f32 to vector<12x1xf32>
    %177 = arith.maximumf %175, %176 : vector<12x1xf32>
    %178 = math.rsqrt %177 : vector<12x1xf32>
    %179 = vector.broadcast %178 : vector<12x1xf32> to vector<12x32xf32>
    %180 = arith.mulf %172, %179 : vector<12x32xf32>
    %181 = arith.select %2, %180, %8 : vector<12x32xf32>
    %c0_80 = arith.constant 0 : index
    %c0_81 = arith.constant 0 : index
    %182 = vector.load %arg11[%c0_80, %c0_81] : memref<32x34xf32, #tpu.memory_space<vmem>>, vector<32x34xf32>
    %cst_82 = arith.constant dense<0.000000e+00> : vector<12x34xf32>
    %183 = tpu.matmul %181, %182, %cst_82 {dimension_numbers = #tpu.dot_dimension_numbers<[1], [0], [0], [1], [0, 0, 1, 1], [], []>} : vector<12x32xf32>, vector<32x34xf32>, vector<12x34xf32> -> vector<12x34xf32>
    %c0_83 = arith.constant 0 : index
    %c0_84 = arith.constant 0 : index
    %184 = vector.load %arg12[%c0_83, %c0_84] : memref<1x34xf32, #tpu.memory_space<vmem>>, vector<1x34xf32>
    %185 = vector.broadcast %184 : vector<1x34xf32> to vector<12x34xf32>
    %186 = arith.addf %183, %185 : vector<12x34xf32>
    %187 = vector.extract_strided_slice %186 {offsets = [0, 0], sizes = [12, 16], strides = [1, 1]} : vector<12x34xf32> to vector<12x16xf32>
    %188 = vector.extract_strided_slice %186 {offsets = [0, 32], sizes = [12, 1], strides = [1, 1]} : vector<12x34xf32> to vector<12x1xf32>
    %189 = arith.negf %188 : vector<12x1xf32>
    %190 = math.exp %189 : vector<12x1xf32>
    %cst_85 = arith.constant 1.000000e+00 : f32
    %191 = vector.broadcast %cst_85 : f32 to vector<12x1xf32>
    %192 = arith.addf %191, %190 : vector<12x1xf32>
    %193 = arith.divf %191, %192 : vector<12x1xf32>
    %194 = vector.broadcast %193 : vector<12x1xf32> to vector<12x16xf32>
    %195 = arith.mulf %187, %194 : vector<12x16xf32>
    %196 = vector.extract_strided_slice %186 {offsets = [0, 16], sizes = [12, 16], strides = [1, 1]} : vector<12x34xf32> to vector<12x16xf32>
    %197 = vector.extract_strided_slice %186 {offsets = [0, 33], sizes = [12, 1], strides = [1, 1]} : vector<12x34xf32> to vector<12x1xf32>
    %198 = arith.negf %197 : vector<12x1xf32>
    %199 = math.exp %198 : vector<12x1xf32>
    %cst_86 = arith.constant 1.000000e+00 : f32
    %200 = vector.broadcast %cst_86 : f32 to vector<12x1xf32>
    %201 = arith.addf %200, %199 : vector<12x1xf32>
    %202 = arith.divf %200, %201 : vector<12x1xf32>
    %203 = vector.broadcast %202 : vector<12x1xf32> to vector<12x16xf32>
    %204 = arith.mulf %196, %203 : vector<12x16xf32>
    %205 = vector.extract_strided_slice %195 {offsets = [0, 0], sizes = [6, 16], strides = [1, 1]} : vector<12x16xf32> to vector<6x16xf32>
    %206 = vector.broadcast %17 : vector<6x1xf32> to vector<6x16xf32>
    %207 = arith.mulf %205, %206 : vector<6x16xf32>
    %cst_87 = arith.constant dense<0.000000e+00> : vector<16xf32>
    %208 = vector.multi_reduction <add>, %207, %cst_87 [0] : vector<6x16xf32> to vector<16xf32>
    %209 = vector.shape_cast %208 : vector<16xf32> to vector<1x16xf32>
    %210 = vector.extract_strided_slice %204 {offsets = [0, 0], sizes = [6, 16], strides = [1, 1]} : vector<12x16xf32> to vector<6x16xf32>
    %211 = vector.broadcast %17 : vector<6x1xf32> to vector<6x16xf32>
    %212 = arith.mulf %210, %211 : vector<6x16xf32>
    %cst_88 = arith.constant dense<0.000000e+00> : vector<16xf32>
    %213 = vector.multi_reduction <add>, %212, %cst_88 [0] : vector<6x16xf32> to vector<16xf32>
    %214 = vector.shape_cast %213 : vector<16xf32> to vector<1x16xf32>
    %215 = vector.extract_strided_slice %195 {offsets = [6, 0], sizes = [6, 16], strides = [1, 1]} : vector<12x16xf32> to vector<6x16xf32>
    %216 = vector.broadcast %17 : vector<6x1xf32> to vector<6x16xf32>
    %217 = arith.mulf %215, %216 : vector<6x16xf32>
    %cst_89 = arith.constant dense<0.000000e+00> : vector<16xf32>
    %218 = vector.multi_reduction <add>, %217, %cst_89 [0] : vector<6x16xf32> to vector<16xf32>
    %219 = vector.shape_cast %218 : vector<16xf32> to vector<1x16xf32>
    %220 = vector.extract_strided_slice %204 {offsets = [6, 0], sizes = [6, 16], strides = [1, 1]} : vector<12x16xf32> to vector<6x16xf32>
    %221 = vector.broadcast %17 : vector<6x1xf32> to vector<6x16xf32>
    %222 = arith.mulf %220, %221 : vector<6x16xf32>
    %cst_90 = arith.constant dense<0.000000e+00> : vector<16xf32>
    %223 = vector.multi_reduction <add>, %222, %cst_90 [0] : vector<6x16xf32> to vector<16xf32>
    %224 = vector.shape_cast %223 : vector<16xf32> to vector<1x16xf32>
    %225 = tpu.concatenate %209, %219 in 0 : vector<1x16xf32>, vector<1x16xf32> -> vector<2x16xf32>
    %226 = arith.mulf %225, %225 : vector<2x16xf32>
    %cst_91 = arith.constant dense<0.000000e+00> : vector<2xf32>
    %227 = vector.multi_reduction <add>, %226, %cst_91 [1] : vector<2x16xf32> to vector<2xf32>
    %228 = vector.shape_cast %227 : vector<2xf32> to vector<2x1xf32>
    %cst_92 = arith.constant 1.000000e-24 : f32
    %229 = vector.broadcast %cst_92 : f32 to vector<2x1xf32>
    %230 = arith.maximumf %228, %229 : vector<2x1xf32>
    %231 = math.rsqrt %230 : vector<2x1xf32>
    %232 = vector.broadcast %231 : vector<2x1xf32> to vector<2x16xf32>
    %233 = arith.mulf %225, %232 : vector<2x16xf32>
    %234 = tpu.concatenate %214, %224 in 0 : vector<1x16xf32>, vector<1x16xf32> -> vector<2x16xf32>
    %235 = arith.mulf %234, %234 : vector<2x16xf32>
    %cst_93 = arith.constant dense<0.000000e+00> : vector<2xf32>
    %236 = vector.multi_reduction <add>, %235, %cst_93 [1] : vector<2x16xf32> to vector<2xf32>
    %237 = vector.shape_cast %236 : vector<2xf32> to vector<2x1xf32>
    %cst_94 = arith.constant 1.000000e-24 : f32
    %238 = vector.broadcast %cst_94 : f32 to vector<2x1xf32>
    %239 = arith.maximumf %237, %238 : vector<2x1xf32>
    %240 = math.rsqrt %239 : vector<2x1xf32>
    %241 = vector.broadcast %240 : vector<2x1xf32> to vector<2x16xf32>
    %242 = arith.mulf %234, %241 : vector<2x16xf32>
    %243 = tpu.concatenate %233, %3 in 1 : vector<2x16xf32>, vector<2x16xf32> -> vector<2x32xf32>
    %c0_95 = arith.constant 0 : index
    %c0_96 = arith.constant 0 : index
    %244 = vector.load %arg13[%c0_95, %c0_96] : memref<32x16xf32, #tpu.memory_space<vmem>>, vector<32x16xf32>
    %cst_97 = arith.constant dense<0.000000e+00> : vector<2x16xf32>
    %245 = tpu.matmul %243, %244, %cst_97 {dimension_numbers = #tpu.dot_dimension_numbers<[1], [0], [0], [1], [0, 0, 1, 1], [], []>} : vector<2x32xf32>, vector<32x16xf32>, vector<2x16xf32> -> vector<2x16xf32>
    %c0_98 = arith.constant 0 : index
    %c0_99 = arith.constant 0 : index
    %246 = vector.load %arg14[%c0_98, %c0_99] : memref<1x16xf32, #tpu.memory_space<vmem>>, vector<1x16xf32>
    %247 = vector.broadcast %246 : vector<1x16xf32> to vector<2x16xf32>
    %248 = arith.addf %245, %247 : vector<2x16xf32>
    %cst_100 = arith.constant 0.000000e+00 : f32
    %249 = vector.broadcast %cst_100 : f32 to vector<2x16xf32>
    %250 = arith.cmpf oge, %248, %249 : vector<2x16xf32>
    %cst_101 = arith.constant 2.000000e-01 : f32
    %251 = vector.broadcast %cst_101 : f32 to vector<2x16xf32>
    %252 = arith.mulf %251, %248 : vector<2x16xf32>
    %253 = arith.select %250, %248, %252 : vector<2x16xi1>, vector<2x16xf32>
    %c0_102 = arith.constant 0 : index
    %c0_103 = arith.constant 0 : index
    %254 = vector.load %arg15[%c0_102, %c0_103] : memref<16x6xf32, #tpu.memory_space<vmem>>, vector<16x6xf32>
    %cst_104 = arith.constant dense<0.000000e+00> : vector<2x6xf32>
    %255 = tpu.matmul %253, %254, %cst_104 {dimension_numbers = #tpu.dot_dimension_numbers<[1], [0], [0], [1], [0, 0, 1, 1], [], []>} : vector<2x16xf32>, vector<16x6xf32>, vector<2x6xf32> -> vector<2x6xf32>
    %c0_105 = arith.constant 0 : index
    %c0_106 = arith.constant 0 : index
    %256 = vector.load %arg16[%c0_105, %c0_106] : memref<1x6xf32, #tpu.memory_space<vmem>>, vector<1x6xf32>
    %257 = vector.broadcast %256 : vector<1x6xf32> to vector<2x6xf32>
    %258 = arith.addf %255, %257 : vector<2x6xf32>
    %259 = tpu.iota {dimensions = array<i32: 1>} : vector<2x6xi32>
    %260 = arith.sitofp %259 : vector<2x6xi32> to vector<2x6xf32>
    %c0_i32_107 = arith.constant 0 : i32
    %261 = vector.broadcast %c0_i32_107 : i32 to vector<2x6xi32>
    %262 = arith.cmpi eq, %259, %261 : vector<2x6xi32>
    %c1_i32 = arith.constant 1 : i32
    %263 = vector.broadcast %c1_i32 : i32 to vector<2x6xi32>
    %264 = arith.cmpi eq, %259, %263 : vector<2x6xi32>
    %265 = arith.ori %262, %264 : vector<2x6xi1>
    %cst_108 = arith.constant -1.000000e+30 : f32
    %266 = vector.broadcast %cst_108 : f32 to vector<2x6xf32>
    %267 = arith.select %265, %266, %258 : vector<2x6xi1>, vector<2x6xf32>
    %cst_109 = arith.constant dense<0xFF800000> : vector<2xf32>
    %268 = vector.multi_reduction <maximumf>, %267, %cst_109 [1] : vector<2x6xf32> to vector<2xf32>
    %269 = vector.shape_cast %268 : vector<2xf32> to vector<2x1xf32>
    %270 = vector.broadcast %269 : vector<2x1xf32> to vector<2x6xf32>
    %271 = arith.subf %267, %270 : vector<2x6xf32>
    %272 = math.exp %271 : vector<2x6xf32>
    %cst_110 = arith.constant dense<0.000000e+00> : vector<2xf32>
    %273 = vector.multi_reduction <add>, %272, %cst_110 [1] : vector<2x6xf32> to vector<2xf32>
    %274 = vector.shape_cast %273 : vector<2xf32> to vector<2x1xf32>
    %275 = vector.broadcast %274 : vector<2x1xf32> to vector<2x6xf32>
    %276 = arith.divf %272, %275 : vector<2x6xf32>
    %277 = vector.broadcast %269 : vector<2x1xf32> to vector<2x6xf32>
    %278 = arith.cmpf oge, %267, %277 : vector<2x6xf32>
    %cst_111 = arith.constant 6.000000e+00 : f32
    %279 = vector.broadcast %cst_111 : f32 to vector<2x6xf32>
    %280 = arith.select %278, %260, %279 : vector<2x6xi1>, vector<2x6xf32>
    %cst_112 = arith.constant dense<0x7F800000> : vector<2xf32>
    %281 = vector.multi_reduction <minimumf>, %280, %cst_112 [1] : vector<2x6xf32> to vector<2xf32>
    %282 = vector.shape_cast %281 : vector<2xf32> to vector<2x1xf32>
    %c5_i32 = arith.constant 5 : i32
    %283 = arith.cmpi sge, %0, %c5_i32 : i32
    %cst_113 = arith.constant 2.000000e+00 : f32
    %284 = vector.broadcast %cst_113 : f32 to vector<2x1xf32>
    %285 = arith.select %283, %284, %282 : vector<2x1xf32>
    %286 = vector.broadcast %285 : vector<2x1xf32> to vector<2x6xf32>
    %287 = arith.cmpf oeq, %260, %286 : vector<2x6xf32>
    %288 = arith.extui %287 : vector<2x6xi1> to vector<2x6xi32>
    %289 = arith.sitofp %288 : vector<2x6xi32> to vector<2x6xf32>
    %290 = arith.select %283, %289, %276 : vector<2x6xf32>
    %cst_114 = arith.constant 2.000000e+00 : f32
    %291 = vector.broadcast %cst_114 : f32 to vector<2x1xf32>
    %292 = arith.cmpf one, %285, %291 : vector<2x1xf32>
    %293 = arith.extui %292 : vector<2x1xi1> to vector<2x1xi32>
    %294 = arith.sitofp %293 : vector<2x1xi32> to vector<2x1xf32>
    %c0_115 = arith.constant 0 : index
    %c0_116 = arith.constant 0 : index
    %295 = vector.load %arg17[%c0_115, %c0_116] : memref<6x32xf32, #tpu.memory_space<vmem>>, vector<6x32xf32>
    %cst_117 = arith.constant dense<0.000000e+00> : vector<2x32xf32>
    %296 = tpu.matmul %289, %295, %cst_117 {dimension_numbers = #tpu.dot_dimension_numbers<[1], [0], [0], [1], [0, 0, 1, 1], [], []>} : vector<2x6xf32>, vector<6x32xf32>, vector<2x32xf32> -> vector<2x32xf32>
    %297 = tpu.concatenate %296, %242, %3 in 1 : vector<2x32xf32>, vector<2x16xf32>, vector<2x16xf32> -> vector<2x64xf32>
    %c0_118 = arith.constant 0 : index
    %c0_119 = arith.constant 0 : index
    %298 = vector.load %arg18[%c0_118, %c0_119] : memref<64x48xf32, #tpu.memory_space<vmem>>, vector<64x48xf32>
    %cst_120 = arith.constant dense<0.000000e+00> : vector<2x48xf32>
    %299 = tpu.matmul %297, %298, %cst_120 {dimension_numbers = #tpu.dot_dimension_numbers<[1], [0], [0], [1], [0, 0, 1, 1], [], []>} : vector<2x64xf32>, vector<64x48xf32>, vector<2x48xf32> -> vector<2x48xf32>
    %c0_121 = arith.constant 0 : index
    %c0_122 = arith.constant 0 : index
    %300 = vector.load %arg19[%c0_121, %c0_122] : memref<1x48xf32, #tpu.memory_space<vmem>>, vector<1x48xf32>
    %301 = vector.broadcast %300 : vector<1x48xf32> to vector<2x48xf32>
    %302 = arith.addf %299, %301 : vector<2x48xf32>
    %cst_123 = arith.constant 0.000000e+00 : f32
    %303 = vector.broadcast %cst_123 : f32 to vector<2x48xf32>
    %304 = arith.cmpf oge, %302, %303 : vector<2x48xf32>
    %cst_124 = arith.constant 2.000000e-01 : f32
    %305 = vector.broadcast %cst_124 : f32 to vector<2x48xf32>
    %306 = arith.mulf %305, %302 : vector<2x48xf32>
    %307 = arith.select %304, %302, %306 : vector<2x48xi1>, vector<2x48xf32>
    %c0_125 = arith.constant 0 : index
    %c0_126 = arith.constant 0 : index
    %308 = vector.load %arg20[%c0_125, %c0_126] : memref<48x32xf32, #tpu.memory_space<vmem>>, vector<48x32xf32>
    %cst_127 = arith.constant dense<0.000000e+00> : vector<2x32xf32>
    %309 = tpu.matmul %307, %308, %cst_127 {dimension_numbers = #tpu.dot_dimension_numbers<[1], [0], [0], [1], [0, 0, 1, 1], [], []>} : vector<2x48xf32>, vector<48x32xf32>, vector<2x32xf32> -> vector<2x32xf32>
    %c0_128 = arith.constant 0 : index
    %c0_129 = arith.constant 0 : index
    %310 = vector.load %arg21[%c0_128, %c0_129] : memref<1x32xf32, #tpu.memory_space<vmem>>, vector<1x32xf32>
    %311 = vector.broadcast %310 : vector<1x32xf32> to vector<2x32xf32>
    %312 = arith.addf %309, %311 : vector<2x32xf32>
    %313 = arith.mulf %312, %312 : vector<2x32xf32>
    %cst_130 = arith.constant dense<0.000000e+00> : vector<2xf32>
    %314 = vector.multi_reduction <add>, %313, %cst_130 [1] : vector<2x32xf32> to vector<2xf32>
    %315 = vector.shape_cast %314 : vector<2xf32> to vector<2x1xf32>
    %cst_131 = arith.constant 1.000000e-24 : f32
    %316 = vector.broadcast %cst_131 : f32 to vector<2x1xf32>
    %317 = arith.maximumf %315, %316 : vector<2x1xf32>
    %318 = math.rsqrt %317 : vector<2x1xf32>
    %319 = vector.broadcast %318 : vector<2x1xf32> to vector<2x32xf32>
    %320 = arith.mulf %312, %319 : vector<2x32xf32>
    %c0_132 = arith.constant 0 : index
    %c0_133 = arith.constant 0 : index
    %321 = vector.load %arg22[%c0_132, %c0_133] : memref<96x48xf32, #tpu.memory_space<vmem>>, vector<96x48xf32>
    %c0_134 = arith.constant 0 : index
    %c0_135 = arith.constant 0 : index
    %322 = vector.load %arg23[%c0_134, %c0_135] : memref<1x48xf32, #tpu.memory_space<vmem>>, vector<1x48xf32>
    %c0_136 = arith.constant 0 : index
    %c0_137 = arith.constant 0 : index
    %323 = vector.load %arg24[%c0_136, %c0_137] : memref<1x48xf32, #tpu.memory_space<vmem>>, vector<1x48xf32>
    %c0_138 = arith.constant 0 : index
    %c0_139 = arith.constant 0 : index
    %324 = vector.load %arg25[%c0_138, %c0_139] : memref<1x1xf32, #tpu.memory_space<vmem>>, vector<1x1xf32>
    %325 = vector.extract_strided_slice %181 {offsets = [0, 0], sizes = [6, 32], strides = [1, 1]} : vector<12x32xf32> to vector<6x32xf32>
    %326 = vector.extract_strided_slice %320 {offsets = [0, 0], sizes = [1, 32], strides = [1, 1]} : vector<2x32xf32> to vector<1x32xf32>
    %327 = vector.shape_cast %326 : vector<1x32xf32> to vector<1x32xf32>
    %328 = vector.broadcast %327 : vector<1x32xf32> to vector<6x32xf32>
    %329 = vector.extract_strided_slice %233 {offsets = [0, 0], sizes = [1, 16], strides = [1, 1]} : vector<2x16xf32> to vector<1x16xf32>
    %330 = vector.shape_cast %329 : vector<1x16xf32> to vector<1x16xf32>
    %331 = vector.broadcast %330 : vector<1x16xf32> to vector<6x16xf32>
    %332 = vector.extract_strided_slice %3 {offsets = [0, 0], sizes = [1, 16], strides = [1, 1]} : vector<2x16xf32> to vector<1x16xf32>
    %333 = vector.shape_cast %332 : vector<1x16xf32> to vector<1x16xf32>
    %334 = vector.broadcast %333 : vector<1x16xf32> to vector<6x16xf32>
    %335 = tpu.concatenate %325, %328, %331, %334 in 1 : vector<6x32xf32>, vector<6x32xf32>, vector<6x16xf32>, vector<6x16xf32> -> vector<6x96xf32>
    %cst_140 = arith.constant dense<0.000000e+00> : vector<6x48xf32>
    %336 = tpu.matmul %335, %321, %cst_140 {dimension_numbers = #tpu.dot_dimension_numbers<[1], [0], [0], [1], [0, 0, 1, 1], [], []>} : vector<6x96xf32>, vector<96x48xf32>, vector<6x48xf32> -> vector<6x48xf32>
    %337 = vector.broadcast %322 : vector<1x48xf32> to vector<6x48xf32>
    %338 = arith.addf %336, %337 : vector<6x48xf32>
    %cst_141 = arith.constant 0.000000e+00 : f32
    %339 = vector.broadcast %cst_141 : f32 to vector<6x48xf32>
    %340 = arith.cmpf oge, %338, %339 : vector<6x48xf32>
    %cst_142 = arith.constant 2.000000e-01 : f32
    %341 = vector.broadcast %cst_142 : f32 to vector<6x48xf32>
    %342 = arith.mulf %341, %338 : vector<6x48xf32>
    %343 = arith.select %340, %338, %342 : vector<6x48xi1>, vector<6x48xf32>
    %344 = vector.broadcast %323 : vector<1x48xf32> to vector<6x48xf32>
    %345 = arith.mulf %343, %344 : vector<6x48xf32>
    %cst_143 = arith.constant dense<0.000000e+00> : vector<6xf32>
    %346 = vector.multi_reduction <add>, %345, %cst_143 [1] : vector<6x48xf32> to vector<6xf32>
    %347 = vector.shape_cast %346 : vector<6xf32> to vector<6x1xf32>
    %348 = vector.broadcast %324 : vector<1x1xf32> to vector<6x1xf32>
    %349 = arith.addf %347, %348 : vector<6x1xf32>
    %350 = arith.negf %349 : vector<6x1xf32>
    %351 = math.exp %350 : vector<6x1xf32>
    %cst_144 = arith.constant 1.000000e+00 : f32
    %352 = vector.broadcast %cst_144 : f32 to vector<6x1xf32>
    %353 = arith.addf %352, %351 : vector<6x1xf32>
    %354 = arith.divf %352, %353 : vector<6x1xf32>
    %355 = arith.mulf %354, %17 : vector<6x1xf32>
    %c0_145 = arith.constant 0 : index
    %c0_146 = arith.constant 0 : index
    %c0_147 = arith.constant 0 : index
    %356 = vector.load %arg29[%c0_145, %c0_146, %c0_147] : memref<2x6x1xf32, #tpu.memory_space<vmem>>, vector<1x6x1xf32>
    %357 = vector.shape_cast %356 : vector<1x6x1xf32> to vector<6x1xf32>
    %358 = vector.shape_cast %355 : vector<6x1xf32> to vector<1x6x1xf32>
    tpu.vector_store %arg29[%c0_145, %c0_146, %c0_147], %358 {strides = array<i32>} : memref<2x6x1xf32, #tpu.memory_space<vmem>>, vector<1x6x1xf32>,
    %359 = vector.broadcast %17 : vector<6x1xf32> to vector<6x32xf32>
    %360 = arith.mulf %325, %359 : vector<6x32xf32>
    %c0_148 = arith.constant 0 : index
    %c0_149 = arith.constant 0 : index
    %c0_150 = arith.constant 0 : index
    %361 = vector.load %arg26[%c0_148, %c0_149, %c0_150] : memref<2x6x32xf32, #tpu.memory_space<vmem>>, vector<1x6x32xf32>
    %362 = vector.shape_cast %361 : vector<1x6x32xf32> to vector<6x32xf32>
    %363 = vector.shape_cast %360 : vector<6x32xf32> to vector<1x6x32xf32>
    tpu.vector_store %arg26[%c0_148, %c0_149, %c0_150], %363 {strides = array<i32>} : memref<2x6x32xf32, #tpu.memory_space<vmem>>, vector<1x6x32xf32>,
    %364 = vector.extract_strided_slice %181 {offsets = [6, 0], sizes = [6, 32], strides = [1, 1]} : vector<12x32xf32> to vector<6x32xf32>
    %365 = vector.extract_strided_slice %320 {offsets = [1, 0], sizes = [1, 32], strides = [1, 1]} : vector<2x32xf32> to vector<1x32xf32>
    %366 = vector.shape_cast %365 : vector<1x32xf32> to vector<1x32xf32>
    %367 = vector.broadcast %366 : vector<1x32xf32> to vector<6x32xf32>
    %368 = vector.extract_strided_slice %233 {offsets = [1, 0], sizes = [1, 16], strides = [1, 1]} : vector<2x16xf32> to vector<1x16xf32>
    %369 = vector.shape_cast %368 : vector<1x16xf32> to vector<1x16xf32>
    %370 = vector.broadcast %369 : vector<1x16xf32> to vector<6x16xf32>
    %371 = vector.extract_strided_slice %3 {offsets = [1, 0], sizes = [1, 16], strides = [1, 1]} : vector<2x16xf32> to vector<1x16xf32>
    %372 = vector.shape_cast %371 : vector<1x16xf32> to vector<1x16xf32>
    %373 = vector.broadcast %372 : vector<1x16xf32> to vector<6x16xf32>
    %374 = tpu.concatenate %364, %367, %370, %373 in 1 : vector<6x32xf32>, vector<6x32xf32>, vector<6x16xf32>, vector<6x16xf32> -> vector<6x96xf32>
    %cst_151 = arith.constant dense<0.000000e+00> : vector<6x48xf32>
    %375 = tpu.matmul %374, %321, %cst_151 {dimension_numbers = #tpu.dot_dimension_numbers<[1], [0], [0], [1], [0, 0, 1, 1], [], []>} : vector<6x96xf32>, vector<96x48xf32>, vector<6x48xf32> -> vector<6x48xf32>
    %376 = vector.broadcast %322 : vector<1x48xf32> to vector<6x48xf32>
    %377 = arith.addf %375, %376 : vector<6x48xf32>
    %cst_152 = arith.constant 0.000000e+00 : f32
    %378 = vector.broadcast %cst_152 : f32 to vector<6x48xf32>
    %379 = arith.cmpf oge, %377, %378 : vector<6x48xf32>
    %cst_153 = arith.constant 2.000000e-01 : f32
    %380 = vector.broadcast %cst_153 : f32 to vector<6x48xf32>
    %381 = arith.mulf %380, %377 : vector<6x48xf32>
    %382 = arith.select %379, %377, %381 : vector<6x48xi1>, vector<6x48xf32>
    %383 = vector.broadcast %323 : vector<1x48xf32> to vector<6x48xf32>
    %384 = arith.mulf %382, %383 : vector<6x48xf32>
    %cst_154 = arith.constant dense<0.000000e+00> : vector<6xf32>
    %385 = vector.multi_reduction <add>, %384, %cst_154 [1] : vector<6x48xf32> to vector<6xf32>
    %386 = vector.shape_cast %385 : vector<6xf32> to vector<6x1xf32>
    %387 = vector.broadcast %324 : vector<1x1xf32> to vector<6x1xf32>
    %388 = arith.addf %386, %387 : vector<6x1xf32>
    %389 = arith.negf %388 : vector<6x1xf32>
    %390 = math.exp %389 : vector<6x1xf32>
    %cst_155 = arith.constant 1.000000e+00 : f32
    %391 = vector.broadcast %cst_155 : f32 to vector<6x1xf32>
    %392 = arith.addf %391, %390 : vector<6x1xf32>
    %393 = arith.divf %391, %392 : vector<6x1xf32>
    %394 = arith.mulf %393, %17 : vector<6x1xf32>
    %c1_156 = arith.constant 1 : index
    %c0_157 = arith.constant 0 : index
    %c0_158 = arith.constant 0 : index
    %395 = vector.load %arg29[%c1_156, %c0_157, %c0_158] : memref<2x6x1xf32, #tpu.memory_space<vmem>>, vector<1x6x1xf32>
    %396 = vector.shape_cast %395 : vector<1x6x1xf32> to vector<6x1xf32>
    %397 = vector.shape_cast %394 : vector<6x1xf32> to vector<1x6x1xf32>
    tpu.vector_store %arg29[%c1_156, %c0_157, %c0_158], %397 {strides = array<i32>} : memref<2x6x1xf32, #tpu.memory_space<vmem>>, vector<1x6x1xf32>,
    %398 = vector.broadcast %17 : vector<6x1xf32> to vector<6x32xf32>
    %399 = arith.mulf %364, %398 : vector<6x32xf32>
    %c1_159 = arith.constant 1 : index
    %c0_160 = arith.constant 0 : index
    %c0_161 = arith.constant 0 : index
    %400 = vector.load %arg26[%c1_159, %c0_160, %c0_161] : memref<2x6x32xf32, #tpu.memory_space<vmem>>, vector<1x6x32xf32>
    %401 = vector.shape_cast %400 : vector<1x6x32xf32> to vector<6x32xf32>
    %402 = vector.shape_cast %399 : vector<6x32xf32> to vector<1x6x32xf32>
    tpu.vector_store %arg26[%c1_159, %c0_160, %c0_161], %402 {strides = array<i32>} : memref<2x6x32xf32, #tpu.memory_space<vmem>>, vector<1x6x32xf32>,
    %c0_162 = arith.constant 0 : index
    %c0_163 = arith.constant 0 : index
    %403 = vector.load %arg27[%c0_162, %c0_163] : memref<2x32xf32, #tpu.memory_space<vmem>>, vector<2x32xf32>
    tpu.vector_store %arg27[%c0_162, %c0_163], %320 {strides = array<i32>} : memref<2x32xf32, #tpu.memory_space<vmem>>, vector<2x32xf32>,
    %c0_164 = arith.constant 0 : index
    %c0_165 = arith.constant 0 : index
    %404 = vector.load %arg28[%c0_164, %c0_165] : memref<2x6xf32, #tpu.memory_space<vmem>>, vector<2x6xf32>
    tpu.vector_store %arg28[%c0_164, %c0_165], %290 {strides = array<i32>} : memref<2x6xf32, #tpu.memory_space<vmem>>, vector<2x6xf32>,
    %c0_166 = arith.constant 0 : index
    %c0_167 = arith.constant 0 : index
    %405 = vector.load %arg30[%c0_166, %c0_167] : memref<2x1xf32, #tpu.memory_space<vmem>>, vector<2x1xf32>
    tpu.vector_store %arg30[%c0_166, %c0_167], %294 {strides = array<i32>} : memref<2x1xf32, #tpu.memory_space<vmem>>, vector<2x1xf32>,
    return
  }
}

</mosaic_0001>

<bundles_post_ra>
// kernel: mul.2
= control target key start
LH: loop header
LB: loop body
LE: loop exit
PB: predicated region body
PF: predicated region fallthrough
CT: control target
= control target key end

     0   :  { %3 = vsyncpa [#allocation1], 0  ;;  %s116_s0 = inlined_call_operand.hbm [shape: f32[2], index: 0, kind: input, shape index: {}, may-alias: {0,2}]   ;;  %s117_s1 = inlined_call_operand.vmem [shape: f32[2], index: 1, kind: input, shape index: {}]   ;;  %s118_s2 = inlined_call_operand.hbm [shape: f32[2], index: 2, kind: output, shape index: {}, may-alias: {0,2}]  }
   0x1   :  { %4 = vsyncpa [#allocation2], 0  ;;  %s8_s0 = sshll.u32 %s116_s0, 4  ;;  %s90_s11 = smov [#allocation0]   ;;  %s9_s0 = int_to_ptr.hbm [resolvable:$true] %s8_s0 }
   0x2   :  { %s10_s12 = sshll.u32 %s90_s11, 4  ;;  %s11_s12 = int_to_ptr.vmem [resolvable:$true] %s10_s12 }
   0x3   :  { %13 = dma.hbm_to_vmem [thread:$0]  %s9_s0, 16, %s11_s12, [#allocation1]  }
   0x4   :  { %86 = dma.done.wait [#allocation1], 16  }
   0x5   :  { %87 = vsyncadd [#allocation1], 4294967280  ;;  %s91_s13 = smov [#allocation3]   ;;  %s28_s2 = sshll.u32 %s118_s2, 4  ;;  %v16_v0 = vld [vmem:[#allocation0] sm:$0x1]  ;;  %s29_s2 = int_to_ptr.hbm [resolvable:$true] %s28_s2 }
   0x6   :  { %s26_s14 = sshll.u32 %s91_s13, 4  ;;  %v17_v1 = vld [vmem:[%s117_s1] sm:$0x1]  ;;  %s27_s14 = int_to_ptr.vmem [resolvable:$true] %s26_s14 }
   0x7   :  { %v20_v2 = vmul.f32 %v17_v1, %v16_v0 }
   0x9   :  { %22 = vst [vmem:[#allocation3] sm:$0x1] %v20_v2 }
   0xa   :  { %31 = dma.vmem_to_hbm [thread:$0]  %s27_s14, 16, %s29_s2, [#allocation2]  }
   0xb   :  { %88 = dma.done.wait [#allocation2], 16  }
   0xc   :  { %89 = vsyncadd [#allocation2], 4294967280 }
   0xd   :  { %34 = vsyncpa [#allocation1], 1 }
   0xe   :  { %35 = vsyncpa [#allocation2], 1 }

// kernel: generator_forward.1
= control target key start
LH: loop header
LB: loop body
LE: loop exit
PB: predicated region body
PF: predicated region fallthrough
CT: control target
= control target key end

     0   :  { %10 = vsyncpa [#allocation3], 0  ;;  %s147_s21 = smov [#allocation2]   ;;  %s148_s23 = smov 128   ;;  %s213_s0 = inlined_call_operand.vmem [shape: f32[4,48], index: 0, kind: input, shape index: {}]   ;;  %s214_s1 = inlined_call_operand.hbm [shape: f32[48,48], index: 1, kind: input, shape index: {}]   ;;  %s215_s2 = inlined_call_operand.vmem [shape: f32[1,48], index: 2, kind: input, shape index: {}]   ;;  %s216_s3 = inlined_call_operand.vmem [shape: f32[48,32], index: 3, kind: input, shape index: {}]   ;;  %s217_s4 = inlined_call_operand.vmem [shape: f32[1,32], index: 4, kind: input, shape index: {}]   ;;  %s218_s5 = inlined_call_operand.vmem [shape: f32[4,32], index: 5, kind: output, shape index: {}]  }
   0x1   :  { %s17_s20 = sshll.u32 %s214_s1, 4  ;;  %s19_s22 = sshll.u32 %s147_s21, 4  ;;  %s18_s20 = int_to_ptr.hbm [resolvable:$true] %s17_s20  ;;  %s20_s22 = int_to_ptr.vmem [resolvable:$true] %s19_s22 }
   0x2   :  { %s149_s24 = smov 8  }
   0x3   :  { %25 = dma.hbm_to_vmem [thread:$0]  %s18_s20, 768, %s20_s22, [#allocation3], %s148_s23, %s148_s23, %s149_s24  }
   0x4   :  { %145 = dma.done.wait [#allocation3], 768  }
   0x5   :  { %146 = vsyncadd [#allocation3], 4294966528  ;;  %v42_v0 = vld [vmem:[#allocation2 + $0x28] sm:$0xff]  ;;  %v41_v1 = vld [vmem:[#allocation2 + $0x20] sm:$0xff]  ;;  %vm47_vm0 = vcmask 392192   ;;  %vm107_vm2 = vcmask 257024  }
   0x6   :  { %61 = vmatpush.msra.mxu0 %v42_v0  ;;  %v40_v2 = vld [vmem:[#allocation2 + $0x18] sm:$0xff]  ;;  %v79_v3 = vld [vmem:[%s216_s3 + $0x28] sm:$0xff]  ;;  %v78_v4 = vld [vmem:[%s216_s3 + $0x20] sm:$0xff] }
   0x7   :  { %97 = vmatpush.msra.mxu1 %v79_v3  ;;  %v39_v5 = vld [vmem:[#allocation2 + $0x10] sm:$0xff]  ;;  %v77_v6 = vld [vmem:[%s216_s3 + $0x18] sm:$0xff]  ;;  %v38_v7 = vld [vmem:[#allocation2 + $0x8] sm:$0xff] }
   0x8   :  { %62 = vmatpush.msra.mxu0 %v41_v1  ;;  %v37_v8 = vld [vmem:[#allocation2] sm:$0xff]  ;;  %v76_v10 = vld [vmem:[%s216_s3 + $0x10] sm:$0xff]  ;;  %v75_v11 = vld [vmem:[%s216_s3 + $0x8] sm:$0xff] }
   0x9   :  { %98 = vmatpush.msra.mxu1 %v78_v4  ;;  %v36_v9 = vld [vmem:[%s213_s0] sm:$0xf] }
   0xa   :  { %63 = vmatpush.msra.mxu0 %v40_v2  ;;  %v74_v12 = vld [vmem:[%s216_s3] sm:$0xff] }
   0xb   :  { %99 = vmatpush.msra.mxu1 %v77_v6  ;;  %v119_v13 = vld [vmem:[%s215_s2] ss:$0 sm:$0xff] }
   0xc   :  { %64 = vmatpush.msra.mxu0 %v39_v5  ;;  %v120_v18 = vld [vmem:[%s217_s4] ss:$0 sm:$0xff] }
   0xd   :  { %100 = vmatpush.msra.mxu1 %v76_v10 }
   0xe   :  { %65 = vmatpush.msra.mxu0 %v38_v7 }
   0xf   :  { %101 = vmatpush.msra.mxu1 %v75_v11 }
  0x10   :  { %66 = vmatpush.msra.mxu0 %v37_v8 }
  0x11   :  { %114 = vmatmul.msk.f32.vlgmr.msra.gmra.mxu0 %vm47_vm0, %v36_v9  ;;  %102 = vmatpush.msra.mxu1 %v74_v12 }
  0x8e   :  { %v68_v14 = vpop.f32.mrf.mxu0 }
  0x8f   :  { %v69_v15 = vadd.f32 %v119_v13, %v68_v14 }
  0x91   :  { %v72_v16 = vmul.f32 0.2, %v69_v15  ;;  %vm71_vm1 = vcmp.ge.f32.partialorder %v69_v15, 0.0 }
  0x93   :  { %v73_v17 = vsel %vm71_vm1, %v69_v15, %v72_v16 }
  0x94   :  { %115 = vmatmul.msk.f32.vlgmr.msra.gmra.mxu1 %vm47_vm0, %v73_v17 }
 0x111   :  { %v104_v19 = vpop.f32.mrf.mxu1 }
 0x112   :  { %v105_v20 = vadd.f32 %v120_v18, %v104_v19 }
 0x114   :  { %108 = vst.msk [vmem:[%s218_s5] sm:$0xf] %vm107_vm2, %v105_v20 }
 0x115   :  { %113 = vsyncpa [#allocation3], 1 }

// kernel: body.3
= control target key start
LH: loop header
LB: loop body
LE: loop exit
PB: predicated region body
PF: predicated region fallthrough
CT: control target
= control target key end

     0   :  { %s1987_s3 = smov 1   ;;  %s1988_s7 = smov 2   ;;  %s2577_s0 = inlined_call_operand.smem [shape: u32[33], index: -1, kind: input, shape index: {}] }
   0x1   :  { %s2038_s6 = sld [smem:[%s2577_s0 + %s1987_s3]]   ;;  %s1989_s11 = smov 3  }
   0x2   :  { %s2043_s10 = sld [smem:[%s2577_s0 + %s1988_s7]]   ;;  %s1990_s15 = smov 4  }
   0x3   :  { %s2048_s14 = sld [smem:[%s2577_s0 + %s1989_s11]]   ;;  %s1991_s19 = smov 5  }
   0x4   :  { %s2053_s18 = sld [smem:[%s2577_s0 + %s1990_s15]]   ;;  %s1992_s23 = smov 6  }
   0x5   :  { %s2058_s22 = sld [smem:[%s2577_s0 + %s1991_s19]]   ;;  %s1993_s27 = smov 7  }
   0x6   :  { %s2063_s26 = sld [smem:[%s2577_s0 + %s1992_s23]]   ;;  %s1994_s1 = smov 8  }
   0x7   :  { %s2068_s30 = sld [smem:[%s2577_s0 + %s1993_s27]]   ;;  %s1995_s5 = smov 9  }
   0x8   :  { %s2073_s4 = sld [smem:[%s2577_s0 + %s1994_s1]]   ;;  %s1996_s11 = smov 10  }
   0x9   :  { %s2078_s9 = sld [smem:[%s2577_s0 + %s1995_s5]]   ;;  %s1997_s16 = smov 11  }
   0xa   :  { %s2083_s15 = sld [smem:[%s2577_s0 + %s1996_s11]]   ;;  %s1998_s21 = smov 12  }
   0xb   :  { %2583 = sst [smem:[#allocation7_spill]] %s2058_s22  ;;  %s1999_s27 = smov 13  }
   0xc   :  { %s2088_s20 = sld [smem:[%s2577_s0 + %s1997_s16]]   ;;  %s2000_s2 = smov 14  }
   0xd   :  { %s2093_s25 = sld [smem:[%s2577_s0 + %s1998_s21]]   ;;  %s2001_s8 = smov 15  }
   0xe   :  { %s2098_s1 = sld [smem:[%s2577_s0 + %s1999_s27]]   ;;  %s2002_s16 = smov 16  }
   0xf   :  { %s2103_s7 = sld [smem:[%s2577_s0 + %s2000_s2]]   ;;  %s2003_s23 = smov 17  }
  0x10   :  { %s2108_s13 = sld [smem:[%s2577_s0 + %s2001_s8]]   ;;  %s2004_s29 = smov 18  }
  0x11   :  { %s2113_s21 = sld [smem:[%s2577_s0 + %s2002_s16]]   ;;  %s2005_s8 = smov 19  }
  0x12   :  { %s2118_s28 = sld [smem:[%s2577_s0 + %s2003_s23]]   ;;  %s2006_s16 = smov 20  }
  0x13   :  { %s2123_s5 = sld [smem:[%s2577_s0 + %s2004_s29]]   ;;  %s2007_s23 = smov 21  }
  0x14   :  { %s2008_s29 = smov 22   ;;  %s2014_s19 = smov 28  }
  0x15   :  { %2584 = sst [smem:[#allocation8_spill]] %s2103_s7  ;;  %s2015_s22 = smov 29  }
  0x16   :  { %2585 = sst [smem:[#allocation9_spill]] %s2108_s13 }
  0x17   :  { %2586 = sst [smem:[#allocation10_spill]] %s2113_s21 }
  0x18   :  { %2587 = sst [smem:[#allocation11_spill]] %s2118_s28 }
  0x19   :  { %2588 = sst [smem:[#allocation12_spill]] %s2123_s5 }
  0x1a   :  { %s2128_s13 = sld [smem:[%s2577_s0 + %s2005_s8]]   ;;  %s2009_s8 = smov 23  }
  0x1b   :  { %s2133_s21 = sld [smem:[%s2577_s0 + %s2006_s16]]   ;;  %s2010_s16 = smov 24  }
  0x1c   :  { %s2138_s28 = sld [smem:[%s2577_s0 + %s2007_s23]]   ;;  %s2011_s23 = smov 25  }
  0x1d   :  { %s2143_s5 = sld [smem:[%s2577_s0 + %s2008_s29]]   ;;  %s2012_s29 = smov 26  }
  0x1e   :  { %s2153_s24 = sld [smem:[%s2577_s0 + %s2010_s16]]  }
  0x1f   :  { %s2158_s2 = sld [smem:[%s2577_s0 + %s2011_s23]]  }
  0x20   :  { %2589 = sst [smem:[#allocation13_spill]] %s2128_s13 }
  0x21   :  { %2590 = sst [smem:[#allocation14_spill]] %s2133_s21 }
  0x22   :  { %2591 = sst [smem:[#allocation15_spill]] %s2138_s28 }
  0x23   :  { %2592 = sst [smem:[#allocation16_spill]] %s2143_s5 }
  0x24   :  { %s2148_s13 = sld [smem:[%s2577_s0 + %s2009_s8]]   ;;  %s2013_s8 = smov 27  }
  0x25   :  { %2594 = sst [smem:[#allocation18_spill]] %s2153_s24  ;;  %s1765_s24 = sshll.u32 %s2038_s6, 1 }
  0x26   :  { %2595 = sst [smem:[#allocation19_spill]] %s2158_s2  ;;  %s2016_s2 = smov 30  }
  0x27   :  { %s2163_s11 = sld [smem:[%s2577_s0 + %s2012_s29]]  }
  0x28   :  { %s1759_s17 = sld [smem:[%s2577_s0 + %s2013_s8]]  }
  0x29   :  { %s1760_s21 = sld [smem:[%s2577_s0 + %s2014_s19]]   ;;  %s2018_s19 = smov 32  }
  0x2a   :  { %2593 = sst [smem:[#allocation17_spill]] %s2148_s13 }
  0x2b   :  { %s2174_s27 = sld [smem:[%s2577_s0 + %s2015_s22]]  }
  0x2c   :  { %s2179_s3 = sld [smem:[%s2577_s0 + %s2016_s2]]  }
  0x2d   :  { %2596 = sst [smem:[#allocation20_spill]] %s2163_s11  ;;  %s2017_s11 = smov 31  }
  0x2e   :  { %s2184_s12 = sld [smem:[%s2577_s0 + %s2017_s11]]   ;;  %v73_v0 = vstv %s1759_s17 }
  0x2f   :  { %s2190_s28 = sld [smem:[%s2577_s0 + %s2018_s19]]   ;;  %s2192_s22 = scalar_lea.vmem %s1760_s21, %s1765_s24   ;;  %74 = vst [vmem:[#allocation2] sm:$0x1] %v73_v0 }
  0x30   :  { %75 = vsyncpa [#allocation4], 0  ;;  %s81_s2 = sshll.u32 %s2043_s10, 4  ;;  %s1977_s6 = scalar_lea.vmem %s2043_s10, 1  ;;  %s82_s2 = int_to_ptr.vmem [resolvable:$true] %s81_s2 }
  0x31   :  { %s1973_s23 = sshra.s32 %s82_s2, 4  ;;  %s1974_s23 = int_to_ptr.vmem [resolvable:$true] %s1973_s23 }
  0x32   :  { %s1975_s11 = scalar_lea.vmem %s1974_s23, 1  ;;  %p1978_p1 = scmp.lt.s32.totalorder %s1974_s23, %s2043_s10 }
  0x33   :  { %p1976_p0 = scmp.ne.s32.totalorder %s1974_s23, %s1975_s11  ;;  %p1979_p2 = scmp.lt.s32.totalorder %s1977_s6, %s1975_s11 }
  0x35   :  { %p1980_p3 = por %p1979_p2, %p1978_p1 }
  0x37   :  { %p1981_p4 = pnand %p1980_p3, %p1976_p0 }
  0x39   :  { %1984 = shalt.err (!%p1981_p4)
}
  0x3a   :  { %s2019_s0 = smov [#allocation3]  }
  0x3b   :  { %84 = dma.vmem_to_smem %s82_s2, 16, %s2019_s0, [#allocation4]  }
  0x3c   :  { %1985 = dma.done.wait [#allocation4], 16  }
  0x3d   :  { %1986 = vsyncadd [#allocation4], 4294967280 }
  0x3e   :  { %139 = sfence }
  0x3f   :  { %v2198_v1 = vld [vmem:[%s2053_s18 + $0x8] sm:$0x3f]  ;;  %v2202_v2 = vld [vmem:[%s2053_s18] sm:$0x3f]  ;;  %vm150_vm0 = vcmask 1045504   ;;  %vm188_vm1 = vcmask 261120  }
  0x40   :  { %303 = vxpose.xlu0.b32.start.end [1/1] (short) (narrow) %v2198_v1, 8  ;;  %v1767_v3 = vld [vmem:[%s2048_s14 + $0x8] sm:$0x3f]  ;;  %v144_v5 = vld [vmem:[%s2048_s14] sm:$0x3f]  ;;  %vm274_vm2 = vcmask 1041408  }
  0x41   :  { %v2206_v4 = vrot.slane %v1767_v3, 2  ;;  %vm190_vm3 = vcmask 48128   ;;  %v172_v12 = vld [vmem:[%s2068_s30 + $0x18] sm:$0xff]  ;;  %v171_v13 = vld [vmem:[%s2068_s30 + $0x10] sm:$0xff]  ;;  %v170_v14 = vld [vmem:[%s2068_s30 + $0x8] sm:$0xff]  ;;  %v2020_v18 = vmov 32  }
  0x42   :  { %v169_v15 = vld [vmem:[%s2068_s30] sm:$0xff]  ;;  %1899 = vset.pattern.permute.xlu2 %v2020_v18  ;;  %1901 = vset.pattern.permute.xlu1 %v2020_v18  ;;  %s2021_s10 = smov 32   ;;  %v168_v27 = vld [vmem:[%s2063_s26 + $0x38] sm:$0xff]  ;;  %v167_v28 = vld [vmem:[%s2063_s26 + $0x30] sm:$0xff]  ;;  %s2022_s14 = smov 64   ;;  %vm419_vm4 = vcmask 523264  }
  0x43   :  { %v2211_v6 = vsel %vm150_vm0, %v144_v5, %v2206_v4  ;;  %v272_v8 = vsel %vm188_vm1, %v2206_v4, 1.0  ;;  %v166_v29 = vld [vmem:[%s2063_s26 + $0x28] sm:$0xff]  ;;  %v165_v30 = vld [vmem:[%s2063_s26 + $0x20] sm:$0xff]  ;;  %v164_v31 = vld [vmem:[%s2063_s26 + $0x18] sm:$0xff]  ;;  %s2023_s18 = smov 96   ;;  %s2603_s7 = sld [smem:[#allocation10_spill]] }
  0x44   :  { %v189_v7 = vsel %vm188_vm1, %v2211_v6, 1.0  ;;  %v276_v10 = vrot.slane %v272_v8, 6  ;;  %v163_v32 = vld [vmem:[%s2063_s26 + $0x10] sm:$0xff]  ;;  %v162_v33 = vld [vmem:[%s2063_s26 + $0x8] sm:$0xff]  ;;  %v161_v35 = vld [vmem:[%s2063_s26] sm:$0xff]  ;;  %s2604_s21 = sld [smem:[#allocation12_spill]] }
  0x45   :  { %v275_v9 = vrot.slane %v189_v7, 6  ;;  %1772 = vmatpush.msk.msra.mxu1 %vm150_vm0, %v189_v7  ;;  %1770 = vmatpush.msk.msra.mxu0 %vm150_vm0, %v189_v7  ;;  %v1905_v36 = vld [vmem:[%s2073_s4] ss:$0 sm:$0xff]  ;;  %v185_v41 = vld [vmem:[%s2083_s15 + $0x18] sm:$0xff]  ;;  %v184_v42 = vld [vmem:[%s2083_s15 + $0x10] sm:$0xff]  ;;  %s2605_s17 = sld [smem:[#allocation13_spill]] }
  0x46   :  { %1771 = vmatmul.msk.f32.vlgmr.msra.gmra.mxu0 %vm190_vm3, %v2202_v2  ;;  %v183_v43 = vld [vmem:[%s2083_s15 + $0x8] sm:$0xff]  ;;  %v182_v45 = vld [vmem:[%s2083_s15] sm:$0xff]  ;;  %v181_v52 = vld [vmem:[%s2078_s9 + $0x38] sm:$0xff]  ;;  %s2027_s5 = smov 112   ;;  %s2606_s13 = sld [smem:[#allocation14_spill]] }
  0x47   :  { %v277_v11 = vsel %vm274_vm2, %v275_v9, %v276_v10  ;;  %434 = vmatpush.msrb.mxu1 %v168_v27  ;;  %v180_v53 = vld [vmem:[%s2078_s9 + $0x30] sm:$0xff]  ;;  %v179_v54 = vld [vmem:[%s2078_s9 + $0x28] sm:$0xff]  ;;  %v178_v55 = vld [vmem:[%s2078_s9 + $0x20] sm:$0xff]  ;;  %s2028_s8 = smov 48   ;;  %s2609_s24 = sld [smem:[#allocation16_spill]] }
  0x48   :  { %217 = vxpose.xlu0.b32.start.end [1/1] (short) (narrow) %v2202_v2, 8  ;;  %1776 = vmatpush.msk.msra.mxu3 %vm150_vm0, %v277_v11  ;;  %v177_v56 = vld [vmem:[%s2078_s9 + $0x18] sm:$0xff]  ;;  %v176_v57 = vld [vmem:[%s2078_s9 + $0x10] sm:$0xff]  ;;  %v175_v58 = vld [vmem:[%s2078_s9 + $0x8] sm:$0xff]  ;;  %s2610_s19 = sld [smem:[#allocation15_spill]] }
  0x49   :  { %1774 = vmatpush.msk.msra.mxu2 %vm150_vm0, %v277_v11  ;;  %435 = vmatpush.msrb.mxu1 %v167_v28  ;;  %v174_v59 = vld [vmem:[%s2078_s9] sm:$0xff]  ;;  %s2611_s16 = sld [smem:[#allocation17_spill]] }
  0x4a   :  { %1775 = vmatmul.msk.f32.vlgmr.msra.gmra.mxu2 %vm190_vm3, %v2198_v1  ;;  %1852 = vmatpush.msrb.mxu3 %v185_v41  ;;  %v1906_v60 = vld [vmem:[%s2093_s25] ss:$0 sm:$0xff]  ;;  %s2612_s2 = sld [smem:[#allocation18_spill]] }
  0x4b   :  { %392 = vmatpush.msrb.mxu2 %v172_v12  ;;  %436 = vmatpush.msrb.mxu1 %v166_v29 }
  0x4c   :  { %1853 = vmatpush.msrb.mxu3 %v184_v42 }
  0x4d   :  { %393 = vmatpush.msrb.mxu2 %v171_v13  ;;  %437 = vmatpush.msrb.mxu1 %v165_v30 }
  0x4e   :  { %1854 = vmatpush.msrb.mxu3 %v183_v43 }
  0x4f   :  { %394 = vmatpush.msrb.mxu2 %v170_v14  ;;  %438 = vmatpush.msrb.mxu1 %v164_v31 }
  0x50   :  { %1855 = vmatpush.msrb.mxu3 %v182_v45 }
  0x51   :  { %395 = vmatpush.msrb.mxu2 %v169_v15  ;;  %439 = vmatpush.msrb.mxu1 %v163_v32 }
  0x52   :  { %1778 = vmatmul.msk.f32.vlgmr.msrb.gmra.mxu2 %vm188_vm1, %v2211_v6 }
  0x53   :  { %440 = vmatpush.msrb.mxu1 %v162_v33  ;;  %486 = vmatpush.msra.mxu2 %v181_v52 }
  0x55   :  { %441 = vmatpush.msrb.mxu1 %v161_v35  ;;  %487 = vmatpush.msra.mxu2 %v180_v53 }
  0x57   :  { %488 = vmatpush.msra.mxu2 %v179_v54 }
  0x59   :  { %489 = vmatpush.msra.mxu2 %v178_v55 }
  0x5a   :  { %1779 = vmatmul.msk.f32.gmra.mxu2 %vm188_vm1, %v2206_v4 }
  0x5b   :  { %490 = vmatpush.msra.mxu2 %v177_v56 }
  0x5d   :  { %491 = vmatpush.msra.mxu2 %v176_v57 }
  0x5f   :  { %492 = vmatpush.msra.mxu2 %v175_v58 }
  0x61   :  { %493 = vmatpush.msra.mxu2 %v174_v59 }
  0xaf   :  { %1900 = vset.pattern.permute.xlu0 %v2020_v18 }
  0xc3   :  { %v214_v21 = vpop.f32.mrf.mxu0 }
  0xcd   :  { %v300_v19 = vpop.f32.mrf.mxu2 }
  0xce   :  { %v359_v20 = vrot.slane %v300_v19, 2  ;;  %v1907_v19 = vld [vmem:[%s2088_s20] ss:$0 sm:$0xff] }
  0xd0   :  { %v361_v22 = vsel %vm150_vm0, %v214_v21, %v359_v20 }
  0xd1   :  { %410 = vperm.xlu0 %1900, %v361_v22  }
  0xd5   :  { %v397_v34 = vpop.f32.mrf.mxu2 }
  0xd6   :  { %v406_v37 = vadd.f32 %v1905_v36, %v397_v34 }
  0xdd   :  { %v400_v40 = vpop.f32.mrf.mxu2 }
  0xde   :  { %v407_v44 = vadd.f32 %v1905_v36, %v400_v40 }
  0xe4   :  { %v2234_v16 = vpop.trf.xlu0 }
  0xe5   :  { %1777 = vmatmul.msk.f32.vlgmr.msra.gmra.mxu3 %vm190_vm3, %v2234_v16 }
  0xec   :  { %v2238_v17 = vpop.trf.xlu0 }
  0xed   :  { %1773 = vmatmul.msk.f32.vlgmr.msra.gmra.mxu1 %vm190_vm3, %v2238_v17  ;;  %1785 = vmatmul.msk.f32.vlgmr.msrb.gmra.mxu3 %vm188_vm1, %v2206_v4 }
  0xee   :  { %516 = vmatpush.msra.mxu1 %v185_v41 }
  0xf0   :  { %517 = vmatpush.msra.mxu1 %v184_v42 }
  0xf2   :  { %518 = vmatpush.msra.mxu1 %v183_v43 }
  0xf4   :  { %519 = vmatpush.msra.mxu1 %v182_v45 }
 0x143   :  { %v411_v63 = vpop.permute.xlu0 %410 }
 0x144   :  { %v417_v0 = vmul.f32 %v411_v63, %v406_v37 }
 0x168   :  { %v355_v23 = vpop.f32.mrf.mxu3 }
 0x169   :  { %v363_v24 = vrot.slane %v355_v23, 2 }
 0x16a   :  { %v269_v25 = vpop.f32.mrf.mxu1 }
 0x16b   :  { %v365_v26 = vsel %vm150_vm0, %v269_v25, %v363_v24 }
 0x16c   :  { %450 = vperm.xlu2 %1899, %v365_v26   ;;  %367 = vrot.lane.b32.xlu1 %v365_v26, %s2021_s10 }
 0x170   :  { %v524_v61 = vpop.f32.mrf.mxu3 }
 0x171   :  { %v525_v62 = vadd.f32 %v1906_v60, %v524_v61 }
 0x174   :  { %454 = vperm.xlu2 %1899, %v363_v24   ;;  %369 = vrot.lane.b32.xlu1 %v363_v24, %s2021_s10 }
 0x17c   :  { %414 = vperm.xlu2 %1899, %v359_v20  }
 0x1c6   :  { %v451_v38 = vpop.permute.xlu2 %450 }
 0x1c7   :  { %v457_v39 = vmul.f32 %v451_v38, %v406_v37 }
 0x1c9   :  { %461 = vrot.lane.b32.xlu1 %v457_v39, %s2022_s14 }
 0x1ce   :  { %v455_v46 = vpop.permute.xlu2 %454 }
 0x1cf   :  { %v458_v47 = vmul.f32 %v455_v46, %v407_v44 }
 0x1d1   :  { %463 = vrot.lane.b32.xlu1 %v458_v47, %s2022_s14 }
 0x1d6   :  { %v415_v9 = vpop.permute.xlu2 %414 }
 0x1d7   :  { %v418_v10 = vmul.f32 %v415_v9, %v407_v44  ;;  %v1796_v9 = vld [vmem:[%s2068_s30 + $0x20] sm:$0xff] }
 0x1d9   :  { %571 = vrot.lane.b32.xlu1 %v525_v62, %s2022_s14 }
 0x1de   :  { %v368_v48 = vpop.permute.xlu1 %367 }
 0x1df   :  { %v373_v49 = vsel %vm188_vm1, %v361_v22, %v368_v48 }
 0x1e0   :  { %1780 = vmatmul.msk.f32.vlgmr.msrb.gmra.mxu1 %vm419_vm4, %v373_v49 }
 0x1e6   :  { %v370_v50 = vpop.permute.xlu1 %369 }
 0x1e7   :  { %v374_v51 = vsel %vm188_vm1, %v359_v20, %v370_v50 }
 0x1e8   :  { %1781 = vmatmul.msk.f32.gmra.mxu1 %vm419_vm4, %v374_v51 }
 0x1f0   :  { %1784 = vmatmul.msk.f32.vlgmr.msra.gmra.mxu1 %vm188_vm1, %v2211_v6 }
 0x23b   :  { %v462_v3 = vpop.permute.xlu1 %461 }
 0x243   :  { %v464_v13 = vpop.permute.xlu1 %463 }
 0x24b   :  { %v572_v51 = vpop.permute.xlu1 %571 }
 0x25d   :  { %v443_v5 = vpop.f32.mrf.mxu1 }
 0x25e   :  { %v444_v7 = vadd.f32 %v443_v5, %v417_v0  ;;  %v1799_v5 = vld [vmem:[%s2068_s30 + $0x38] sm:$0xff] }
 0x25f   :  { %777 = vmatpush.msrb.mxu2 %v1799_v5  ;;  %v1801_v5 = vld [vmem:[%s2078_s9 + $0x40] sm:$0xff] }
 0x260   :  { %v467_v8 = vadd.f32 %v462_v3, %v444_v7  ;;  %v1798_v7 = vld [vmem:[%s2068_s30 + $0x30] sm:$0xff] }
 0x261   :  { %778 = vmatpush.msrb.mxu2 %v1798_v7 }
 0x262   :  { %1782 = vmatmul.msk.f32.vlgmr.msra.gmra.mxu2 %vm419_vm4, %v467_v8  ;;  %v1797_v8 = vld [vmem:[%s2068_s30 + $0x28] sm:$0xff] }
 0x263   :  { %779 = vmatpush.msrb.mxu2 %v1797_v8 }
 0x265   :  { %v446_v11 = vpop.f32.mrf.mxu1  ;;  %780 = vmatpush.msrb.mxu2 %v1796_v9 }
 0x266   :  { %v447_v12 = vadd.f32 %v446_v11, %v418_v10 }
 0x268   :  { %v468_v14 = vadd.f32 %v464_v13, %v447_v12 }
 0x26a   :  { %1783 = vmatmul.msk.f32.gmra.mxu2 %vm419_vm4, %v468_v14 }
 0x26d   :  { %v521_v15 = vpop.f32.mrf.mxu1 }
 0x26e   :  { %v522_v18 = vadd.f32 %v1906_v60, %v521_v15 }
 0x270   :  { %569 = vrot.lane.b32.xlu2 %v522_v18, %s2022_s14 }
 0x2ca   :  { %v570_v40 = vpop.permute.xlu2 %569 }
 0x2e5   :  { %v495_v20 = vpop.f32.mrf.mxu2 }
 0x2e6   :  { %v496_v21 = vadd.f32 %v1907_v19, %v495_v20 }
 0x2e8   :  { %v527_v22 = vadd.f32 %v522_v18, %v496_v21 }
 0x2ea   :  { %v1786_v23 = vmul.f32 -1.442695, %v527_v22 }
 0x2ec   :  { %1919 = vpow2.f32 %v1786_v23 }
 0x2ed   :  { %v498_v24 = vpop.f32.mrf.mxu2 }
 0x2ee   :  { %v499_v25 = vadd.f32 %v1907_v19, %v498_v24 }
 0x2f0   :  { %v528_v26 = vadd.f32 %v525_v62, %v499_v25 }
 0x2f2   :  { %v1920_v27 = vpop.eup %1919  ;;  %v1787_v28 = vmul.f32 -1.442695, %v528_v26  ;;  %v1809_v26 = vld [vmem:[%s2083_s15 + $0x20] sm:$0xff] }
 0x2f3   :  { %v535_v29 = vadd.f32 1.0, %v1920_v27 }
 0x2f4   :  { %1921 = vpow2.f32 %v1787_v28 }
 0x2f5   :  { %1923 = vrcp.f32 %v535_v29  ;;  %v548_v35 = vand.u32 2147483648, %v535_v29  ;;  %v546_v37 = vand.u32 2147483647, %v535_v29  ;;  %vm542_vm6 = vweird.f32 %v535_v29 }
 0x2f7   :  { %v549_v41 = vor.u32 1.1754944e-38, %v548_v35  ;;  %vm547_vm8 = vcmp.eq.f32.partialorder %v546_v37, 8.507059e+37  ;;  %v1791_v35 = vld [vmem:[%s2063_s26 + $0x58] sm:$0xff] }
 0x2fa   :  { %v1922_v30 = vpop.eup %1921 }
 0x2fb   :  { %v1924_v31 = vpop.eup %1923  ;;  %v536_v32 = vadd.f32 1.0, %v1922_v30  ;;  %v1795_v30 = vld [vmem:[%s2063_s26 + $0x78] sm:$0xff] }
 0x2fc   :  { %v538_v33 = vmul.f32 %v1924_v31, %v535_v29  ;;  %vm543_vm5 = vweird.f32 %v1924_v31 }
 0x2fd   :  { %1925 = vrcp.f32 %v536_v32  ;;  %vm544_vm7 = vmor %vm542_vm6, %vm543_vm5  ;;  %v563_v47 = vand.u32 2147483648, %v536_v32  ;;  %v561_v49 = vand.u32 2147483647, %v536_v32  ;;  %vm557_vm10 = vweird.f32 %v536_v32 }
 0x2fe   :  { %v539_v34 = vsub.f32 1.0, %v538_v33  ;;  %v1792_v33 = vld [vmem:[%s2063_s26 + $0x60] sm:$0xff] }
 0x2ff   :  { %v564_v52 = vor.u32 1.1754944e-38, %v563_v47  ;;  %vm562_vm12 = vcmp.eq.f32.partialorder %v561_v49, 8.507059e+37 }
 0x300   :  { %v540_v36 = vmul.f32 %v1924_v31, %v539_v34 }
 0x302   :  { %v541_v38 = vadd.f32 %v1924_v31, %v540_v36  ;;  %v1790_v36 = vld [vmem:[%s2063_s26 + $0x50] sm:$0xff] }
 0x303   :  { %v1926_v39 = vpop.eup %1925 }
 0x304   :  { %v545_v42 = vsel %vm544_vm7, %v1924_v31, %v541_v38  ;;  %v553_v43 = vmul.f32 %v1926_v39, %v536_v32  ;;  %vm558_vm9 = vweird.f32 %v1926_v39  ;;  %v1794_v31 = vld [vmem:[%s2063_s26 + $0x70] sm:$0xff]  ;;  %v1793_v32 = vld [vmem:[%s2063_s26 + $0x68] sm:$0xff] }
 0x305   :  { %v550_v44 = vsel %vm547_vm8, %v549_v41, %v545_v42  ;;  %vm559_vm11 = vmor %vm557_vm10, %vm558_vm9  ;;  %v1789_v38 = vld [vmem:[%s2063_s26 + $0x48] sm:$0xff]  ;;  %vm1002_vm10 = vcmask 257024  }
 0x306   :  { %v575_v45 = vmul.f32 %v570_v40, %v550_v44  ;;  %v554_v46 = vsub.f32 1.0, %v553_v43  ;;  %v1909_v40 = vld [vmem:[%s2093_s25 + $0x1] ss:$0 sm:$0xff]  ;;  %s2601_s25 = sld [smem:[#allocation9_spill]] }
 0x307   :  { %v1788_v43 = vld [vmem:[%s2063_s26 + $0x40] sm:$0xff]  ;;  %s1766_s26 = sld [smem:[#allocation3 + $0x1]] }
 0x308   :  { %579 = vrot.lane.b32.xlu2 %v575_v45, %s2022_s14  ;;  %v555_v48 = vmul.f32 %v1926_v39, %v554_v46  ;;  %v1908_v46 = vld [vmem:[%s2073_s4 + $0x1] ss:$0 sm:$0xff]  ;;  %s2599_s4 = sld [smem:[#allocation8_spill]] }
 0x30a   :  { %v556_v50 = vadd.f32 %v1926_v39, %v555_v48 }
 0x30c   :  { %v560_v53 = vsel %vm559_vm11, %v1926_v39, %v556_v50 }
 0x30d   :  { %v565_v54 = vsel %vm562_vm12, %v564_v52, %v560_v53  ;;  %p142_p5 = scmp.gt.s32.totalorder %s1766_s26, 0 }
 0x30e   :  { %v576_v55 = vmul.f32 %v572_v51, %v565_v54  ;;  %v590_v11 = vsub.f32 1.0, %v565_v54  ;;  %v1808_v51 = vld [vmem:[%s2078_s9 + $0x78] sm:$0xff] }
 0x30f   :  { %s1030_s30 = scalar_select %p142_p5, 1, 0 }
 0x310   :  { %581 = vrot.lane.b32.xlu1 %v576_v55, %s2022_s14 }
 0x318   :  { %601 = vrot.lane.b32.xlu1 %v2211_v6, %s2021_s10 }
 0x320   :  { %603 = vrot.lane.b32.xlu1 %v2206_v4, %s2021_s10  ;;  %v589_v4 = vsub.f32 1.0, %v550_v44 }
 0x362   :  { %v580_v56 = vpop.permute.xlu2 %579 }
 0x363   :  { %v585_v57 = vadd.f32 %v580_v56, %v496_v21 }
 0x365   :  { %1927 = vtanh.f32 %v585_v57 }
 0x36b   :  { %v1928_v58 = vpop.eup %1927 }
 0x36c   :  { %593 = vrot.lane.b32.xlu2 %v1928_v58, %s2023_s18 }
 0x382   :  { %v582_v59 = vpop.permute.xlu1 %581 }
 0x383   :  { %v586_v60 = vadd.f32 %v582_v59, %v499_v25  ;;  %v1812_v25 = vld [vmem:[%s2083_s15 + $0x38] sm:$0xff] }
 0x385   :  { %1929 = vtanh.f32 %v586_v60  ;;  %v1807_v60 = vld [vmem:[%s2078_s9 + $0x70] sm:$0xff] }
 0x38a   :  { %v2291_v6 = vpop.permute.xlu1 %601 }
 0x38b   :  { %v1930_v61 = vpop.eup %1929  ;;  %v607_v63 = vmul.f32 %v2291_v6, %v550_v44 }
 0x38c   :  { %595 = vrot.lane.b32.xlu2 %v1930_v61, %s2023_s18  ;;  %v1806_v61 = vld [vmem:[%s2078_s9 + $0x68] sm:$0xff] }
 0x392   :  { %v2302_v10 = vpop.permute.xlu1 %603 }
 0x393   :  { %v608_v13 = vmul.f32 %v2302_v10, %v565_v54 }
 0x3c6   :  { %v594_v62 = vpop.permute.xlu2 %593 }
 0x3c7   :  { %v599_v0 = vmul.f32 %v594_v62, %v589_v4  ;;  %v1805_v4 = vld [vmem:[%s2078_s9 + $0x60] sm:$0xff]  ;;  %v1804_v62 = vld [vmem:[%s2078_s9 + $0x58] sm:$0xff] }
 0x3c9   :  { %v2294_v3 = vadd.f32 %v607_v63, %v599_v0  ;;  %v1803_v63 = vld [vmem:[%s2078_s9 + $0x50] sm:$0xff]  ;;  %v1802_v0 = vld [vmem:[%s2078_s9 + $0x48] sm:$0xff]  ;;  %s2600_s9 = sld [smem:[#allocation7_spill]] }
 0x3cb   :  { %646 = vrot.lane.b32.xlu2 %v2294_v3, %s2023_s18 }
 0x3e6   :  { %v596_v12 = vpop.permute.xlu2 %595 }
 0x3e7   :  { %v600_v14 = vmul.f32 %v596_v12, %v590_v11 }
 0x3e9   :  { %v2305_v15 = vadd.f32 %v608_v13, %v600_v14 }
 0x3eb   :  { %694 = vrot.lane.b32.xlu1 %v2305_v15, %s2023_s18 }
 0x425   :  { %v647_v18 = vpop.permute.xlu2 %646 }
 0x426   :  { %1823 = vmatmul.msk.f32.vlgmr.msrb.gmra.mxu2 %vm188_vm1, %v647_v18  ;;  %v649_v19 = vsel %vm188_vm1, %v647_v18, 1.0 }
 0x427   :  { %1815 = vmatpush.msk.msrb.mxu0 %vm150_vm0, %v649_v19  ;;  %1817 = vmatpush.msk.msra.mxu3 %vm150_vm0, %v649_v19  ;;  %v699_v22 = vrot.slane %v649_v19, 6 }
 0x428   :  { %1818 = vmatmul.msk.f32.vlgmr.msra.gmra.mxu3 %vm190_vm3, %v2238_v17  ;;  %1816 = vmatmul.msk.f32.vlgmr.msrb.gmra.mxu0 %vm190_vm3, %v2202_v2  ;;  %v1811_v17 = vld [vmem:[%s2083_s15 + $0x30] sm:$0xff]  ;;  %v1810_v2 = vld [vmem:[%s2083_s15 + $0x28] sm:$0xff]  ;;  %s2024_s15 = smov 16  }
 0x429   :  { %818 = vmatpush.msrb.mxu3 %v1795_v30 }
 0x42b   :  { %819 = vmatpush.msrb.mxu3 %v1794_v31 }
 0x42d   :  { %820 = vmatpush.msrb.mxu3 %v1793_v32 }
 0x42f   :  { %821 = vmatpush.msrb.mxu3 %v1792_v33 }
 0x431   :  { %822 = vmatpush.msrb.mxu3 %v1791_v35 }
 0x433   :  { %823 = vmatpush.msrb.mxu3 %v1790_v36 }
 0x435   :  { %824 = vmatpush.msrb.mxu3 %v1789_v38 }
 0x437   :  { %825 = vmatpush.msrb.mxu3 %v1788_v43 }
 0x45d   :  { %v695_v20 = vpop.permute.xlu1 %694 }
 0x45e   :  { %v697_v21 = vsel %vm188_vm1, %v695_v20, 1.0  ;;  %1824 = vmatmul.msk.f32.gmra.mxu2 %vm188_vm1, %v695_v20 }
 0x45f   :  { %v700_v23 = vrot.slane %v697_v21, 6 }
 0x461   :  { %v701_v24 = vsel %vm274_vm2, %v699_v22, %v700_v23  ;;  %v1910_v23 = vld [vmem:[%s2088_s20 + $0x1] ss:$0 sm:$0xff]  ;;  %s2420_s20 = sld [smem:[#allocation3]] }
 0x462   :  { %1819 = vmatpush.msk.msra.mxu0 %vm150_vm0, %v701_v24  ;;  %1821 = vmatpush.msk.msrb.mxu1 %vm150_vm0, %v701_v24 }
 0x463   :  { %1822 = vmatmul.msk.f32.vlgmr.msrb.gmra.mxu1 %vm190_vm3, %v2234_v16  ;;  %1820 = vmatmul.msk.f32.vlgmr.msra.gmra.mxu0 %vm190_vm3, %v2198_v1 }
 0x464   :  { %900 = vmatpush.msra.mxu1 %v1812_v25  ;;  %870 = vmatpush.msrb.mxu0 %v1808_v51 }
 0x466   :  { %901 = vmatpush.msra.mxu1 %v1811_v17  ;;  %871 = vmatpush.msrb.mxu0 %v1807_v60 }
 0x467   :  { %p1333_p6 = scmp.ge.s32.totalorder %s2420_s20, 5 }
 0x468   :  { %902 = vmatpush.msra.mxu1 %v1810_v2  ;;  %872 = vmatpush.msrb.mxu0 %v1806_v61 }
 0x469   :  { %s1334_s29 = scalar_select %p1333_p6, 1, 0 }
 0x46a   :  { %903 = vmatpush.msra.mxu1 %v1809_v26  ;;  %873 = vmatpush.msrb.mxu0 %v1805_v4 }
 0x46b   :  { %1829 = vmatmul.msk.f32.vlgmr.msra.gmra.mxu1 %vm188_vm1, %v647_v18 }
 0x46c   :  { %874 = vmatpush.msrb.mxu0 %v1804_v62 }
 0x46e   :  { %875 = vmatpush.msrb.mxu0 %v1803_v63 }
 0x470   :  { %876 = vmatpush.msrb.mxu0 %v1802_v0 }
 0x472   :  { %877 = vmatpush.msrb.mxu0 %v1801_v5 }
 0x473   :  { %1830 = vmatmul.msk.f32.gmra.mxu1 %vm188_vm1, %v695_v20 }
 0x4a5   :  { %v670_v27 = vpop.f32.mrf.mxu0 }
 0x4a9   :  { %v782_v47 = vpop.f32.mrf.mxu2 }
 0x4aa   :  { %v791_v48 = vadd.f32 %v1908_v46, %v782_v47 }
 0x4ab   :  { %v690_v29 = vpop.f32.mrf.mxu3 }
 0x4e0   :  { %v741_v16 = vpop.f32.mrf.mxu1  ;;  %v721_v34 = vpop.f32.mrf.mxu0 }
 0x4e1   :  { %v749_v28 = vrot.slane %v741_v16, 2  ;;  %v745_v37 = vrot.slane %v721_v34, 2  ;;  %v785_v54 = vpop.f32.mrf.mxu2 }
 0x4e2   :  { %v792_v55 = vadd.f32 %v1908_v46, %v785_v54 }
 0x4e3   :  { %755 = vrot.lane.b32.xlu1 %v749_v28, %s2021_s10  ;;  %v751_v1 = vsel %vm150_vm0, %v690_v29, %v749_v28  ;;  %v747_v39 = vsel %vm150_vm0, %v670_v27, %v745_v37 }
 0x4e4   :  { %753 = vrot.lane.b32.xlu2 %v751_v1, %s2021_s10 }
 0x4e8   :  { %v905_v41 = vpop.f32.mrf.mxu1 }
 0x4e9   :  { %v906_v42 = vadd.f32 %v1909_v40, %v905_v41 }
 0x4eb   :  { %838 = vperm.xlu1 %1901, %v749_v28  }
 0x4ec   :  { %834 = vperm.xlu2 %1899, %v751_v1  }
 0x4f0   :  { %v908_v58 = vpop.f32.mrf.mxu1 }
 0x4f1   :  { %v909_v59 = vadd.f32 %v1909_v40, %v908_v58 }
 0x4f4   :  { %795 = vperm.xlu2 %1899, %v747_v39  }
 0x4fc   :  { %799 = vperm.xlu2 %1899, %v745_v37  }
 0x504   :  { %953 = vrot.lane.b32.xlu2 %v906_v42, %s2022_s14 }
 0x53e   :  { %v754_v44 = vpop.permute.xlu2 %753 }
 0x53f   :  { %v759_v45 = vsel %vm188_vm1, %v747_v39, %v754_v44 }
 0x540   :  { %1825 = vmatmul.msk.f32.vlgmr.msrb.gmra.mxu3 %vm419_vm4, %v759_v45 }
 0x546   :  { %v835_v49 = vpop.permute.xlu2 %834 }
 0x547   :  { %v841_v50 = vmul.f32 %v835_v49, %v791_v48 }
 0x549   :  { %845 = vrot.lane.b32.xlu1 %v841_v50, %s2022_s14 }
 0x54e   :  { %v796_v7 = vpop.permute.xlu2 %795 }
 0x54f   :  { %v802_v8 = vmul.f32 %v796_v7, %v791_v48 }
 0x555   :  { %v756_v52 = vpop.permute.xlu1 %755 }
 0x556   :  { %v760_v53 = vsel %vm188_vm1, %v745_v37, %v756_v52  ;;  %v800_v14 = vpop.permute.xlu2 %799 }
 0x557   :  { %1826 = vmatmul.msk.f32.gmra.mxu3 %vm419_vm4, %v760_v53  ;;  %v803_v18 = vmul.f32 %v800_v14, %v792_v55 }
 0x55d   :  { %v839_v56 = vpop.permute.xlu1 %838 }
 0x55e   :  { %v842_v57 = vmul.f32 %v839_v56, %v792_v55  ;;  %v954_v39 = vpop.permute.xlu2 %953 }
 0x560   :  { %847 = vrot.lane.b32.xlu1 %v842_v57, %s2022_s14 }
 0x568   :  { %955 = vrot.lane.b32.xlu1 %v909_v59, %s2022_s14 }
 0x5bb   :  { %v846_v12 = vpop.permute.xlu1 %845 }
 0x5c3   :  { %v827_v9 = vpop.f32.mrf.mxu3 }
 0x5c4   :  { %v828_v11 = vadd.f32 %v827_v9, %v802_v8 }
 0x5c6   :  { %v851_v13 = vadd.f32 %v846_v12, %v828_v11 }
 0x5c8   :  { %1827 = vmatmul.msk.f32.vlgmr.msrb.gmra.mxu0 %vm419_vm4, %v851_v13 }
 0x5d2   :  { %v848_v21 = vpop.permute.xlu1 %847 }
 0x5da   :  { %v830_v19 = vpop.f32.mrf.mxu3  ;;  %v956_v53 = vpop.permute.xlu1 %955 }
 0x5db   :  { %v831_v20 = vadd.f32 %v830_v19, %v803_v18 }
 0x5dd   :  { %v852_v22 = vadd.f32 %v848_v21, %v831_v20 }
 0x5df   :  { %1828 = vmatmul.msk.f32.gmra.mxu0 %vm419_vm4, %v852_v22 }
 0x645   :  { %v879_v24 = vpop.f32.mrf.mxu0 }
 0x646   :  { %v880_v25 = vadd.f32 %v1910_v23, %v879_v24 }
 0x648   :  { %v911_v17 = vadd.f32 %v906_v42, %v880_v25 }
 0x64a   :  { %v1831_v2 = vmul.f32 -1.442695, %v911_v17 }
 0x64c   :  { %1931 = vpow2.f32 %v1831_v2  ;;  %v1031_v2 = vstv %s1030_s30 }
 0x652   :  { %v1932_v26 = vpop.eup %1931 }
 0x653   :  { %v919_v16 = vadd.f32 1.0, %v1932_v26 }
 0x655   :  { %1933 = vrcp.f32 %v919_v16  ;;  %v932_v32 = vand.u32 2147483648, %v919_v16  ;;  %v930_v34 = vand.u32 2147483647, %v919_v16  ;;  %vm926_vm14 = vweird.f32 %v919_v16 }
 0x657   :  { %v933_v37 = vor.u32 1.1754944e-38, %v932_v32  ;;  %vm931_vm5 = vcmp.eq.f32.partialorder %v930_v34, 8.507059e+37  ;;  %v1035_v32 = vld [vmem:[%s2098_s1] sm:$0xff] }
 0x65b   :  { %v1934_v27 = vpop.eup %1933 }
 0x65c   :  { %v882_v28 = vpop.f32.mrf.mxu0  ;;  %v922_v29 = vmul.f32 %v1934_v27, %v919_v16  ;;  %vm927_vm13 = vweird.f32 %v1934_v27 }
 0x65d   :  { %v883_v1 = vadd.f32 %v1910_v23, %v882_v28  ;;  %vm928_vm15 = vmor %vm926_vm14, %vm927_vm13  ;;  %vm2375_vm14 = vcmp.eq.s32.totalorder %v1031_v2, 1 }
 0x65e   :  { %v923_v30 = vsub.f32 1.0, %v922_v29 }
 0x65f   :  { %v912_v31 = vadd.f32 %v909_v59, %v883_v1 }
 0x660   :  { %v924_v33 = vmul.f32 %v1934_v27, %v923_v30  ;;  %v1037_v30 = vld [vmem:[%s2098_s1 + $0x10] sm:$0xff] }
 0x661   :  { %v1832_v35 = vmul.f32 -1.442695, %v912_v31  ;;  %v1036_v31 = vld [vmem:[%s2098_s1 + $0x8] sm:$0xff] }
 0x662   :  { %v925_v36 = vadd.f32 %v1934_v27, %v924_v33 }
 0x663   :  { %1935 = vpow2.f32 %v1832_v35 }
 0x664   :  { %v929_v38 = vsel %vm928_vm15, %v1934_v27, %v925_v36 }
 0x665   :  { %v934_v40 = vsel %vm931_vm5, %v933_v37, %v929_v38 }
 0x666   :  { %v959_v41 = vmul.f32 %v954_v39, %v934_v40  ;;  %v973_v4 = vsub.f32 1.0, %v934_v40  ;;  %v985_v63 = vmul.f32 %v934_v40, %v2294_v3 }
 0x668   :  { %963 = vrot.lane.b32.xlu2 %v959_v41, %s2022_s14 }
 0x669   :  { %v1936_v42 = vpop.eup %1935 }
 0x66a   :  { %v920_v43 = vadd.f32 1.0, %v1936_v42 }
 0x66c   :  { %1937 = vrcp.f32 %v920_v43  ;;  %v947_v47 = vand.u32 2147483648, %v920_v43  ;;  %v945_v49 = vand.u32 2147483647, %v920_v43  ;;  %vm941_vm7 = vweird.f32 %v920_v43 }
 0x66e   :  { %v948_v51 = vor.u32 1.1754944e-38, %v947_v47  ;;  %vm946_vm9 = vcmp.eq.f32.partialorder %v945_v49, 8.507059e+37 }
 0x672   :  { %v1938_v44 = vpop.eup %1937 }
 0x673   :  { %v937_v45 = vmul.f32 %v1938_v44, %v920_v43  ;;  %vm942_vm6 = vweird.f32 %v1938_v44 }
 0x674   :  { %vm943_vm8 = vmor %vm941_vm7, %vm942_vm6 }
 0x675   :  { %v938_v46 = vsub.f32 1.0, %v937_v45  ;;  %v1911_v45 = vld [vmem:[%s2599_s4] ss:$0 sm:$0xff] }
 0x677   :  { %v939_v48 = vmul.f32 %v1938_v44, %v938_v46 }
 0x679   :  { %v940_v50 = vadd.f32 %v1938_v44, %v939_v48 }
 0x67b   :  { %v944_v52 = vsel %vm943_vm8, %v1938_v44, %v940_v50 }
 0x67c   :  { %v949_v54 = vsel %vm946_vm9, %v948_v51, %v944_v52 }
 0x67d   :  { %v960_v55 = vmul.f32 %v956_v53, %v949_v54  ;;  %v974_v8 = vsub.f32 1.0, %v949_v54  ;;  %v986_v11 = vmul.f32 %v949_v54, %v2305_v15 }
 0x67f   :  { %965 = vrot.lane.b32.xlu1 %v960_v55, %s2022_s14 }
 0x6c2   :  { %v964_v56 = vpop.permute.xlu2 %963 }
 0x6c3   :  { %v969_v57 = vadd.f32 %v964_v56, %v880_v25 }
 0x6c5   :  { %1939 = vtanh.f32 %v969_v57 }
 0x6cb   :  { %v1940_v58 = vpop.eup %1939 }
 0x6cc   :  { %977 = vrot.lane.b32.xlu2 %v1940_v58, %s2023_s18 }
 0x6f1   :  { %v966_v59 = vpop.permute.xlu1 %965 }
 0x6f2   :  { %v970_v60 = vadd.f32 %v966_v59, %v883_v1  ;;  %v1038_v1 = vld [vmem:[%s2098_s1 + $0x18] sm:$0xff]  ;;  %s2602_s1 = sld [smem:[#allocation11_spill]] }
 0x6f3   :  { %1065 = vmatpush.msra.mxu2 %v1038_v1 }
 0x6f4   :  { %1941 = vtanh.f32 %v970_v60  ;;  %v2413_v60 = vld [vmem:[%s2600_s9] sm:$0x3] }
 0x6f5   :  { %1066 = vmatpush.msra.mxu2 %v1037_v30 }
 0x6f7   :  { %1067 = vmatpush.msra.mxu2 %v1036_v31 }
 0x6f9   :  { %1068 = vmatpush.msra.mxu2 %v1035_v32 }
 0x6fa   :  { %v1942_v61 = vpop.eup %1941 }
 0x6fb   :  { %979 = vrot.lane.b32.xlu1 %v1942_v61, %s2023_s18  ;;  %v2025_v61 = vmov 33  }
 0x6fc   :  { %1902 = vset.pattern.permute.xlu1 %v2025_v61  ;;  %1903 = vset.pattern.permute.xlu2 %v2025_v61 }
 0x726   :  { %v978_v62 = vpop.permute.xlu2 %977 }
 0x727   :  { %v983_v0 = vmul.f32 %v978_v62, %v973_v4 }
 0x729   :  { %v987_v5 = vadd.f32 %v985_v63, %v983_v0 }
 0x72b   :  { %v989_v7 = vmul.f32 %v987_v5, %v987_v5 }
 0x72d   :  { %993 = vrot.lane.b32.xlu2 %v989_v7, %s2023_s18 }
 0x76d   :  { %v980_v9 = vpop.permute.xlu1 %979 }
 0x76e   :  { %v984_v12 = vmul.f32 %v980_v9, %v974_v8 }
 0x770   :  { %v988_v13 = vadd.f32 %v986_v11, %v984_v12 }
 0x772   :  { %v990_v14 = vmul.f32 %v988_v13, %v988_v13 }
 0x774   :  { %995 = vrot.lane.b32.xlu0 %v990_v14, %s2023_s18 }
 0x787   :  { %v994_v18 = vpop.permute.xlu2 %993 }
 0x788   :  { %v999_v19 = vsel %vm188_vm1, %v994_v18, 0.0 }
 0x789   :  { %1000 = vadd.xlane.f32.xlu1 %v999_v19 }
 0x7e6   :  { %v996_v3 = vpop.permute.xlu0 %995 }
 0x7e7   :  { %v1003_v20 = vsel %vm1002_vm10, %v996_v3, 0.0 }
 0x7e8   :  { %1004 = vadd.xlane.f32.xlu2 %v1003_v20  ;;  %v155_v20 = vlaneseq }
 0x7fc   :  { %v1001_v21 = vpop.xlane.xlu1 %1000 }
 0x7fd   :  { %v1006_v22 = vmax.f32 %v1001_v21, 1e-24  ;;  %v156_v21 = vshrl.u32 %v155_v20, 7 }
 0x7ff   :  { %1943 = vrsqrt.f32 %v1006_v22  ;;  %vm1014_vm12 = vweird.f32 %v1006_v22 }
 0x800   :  { %1228 = vrot.lane.b32.xlu2 %v2413_v60, %s2024_s15 }
 0x805   :  { %v1944_v23 = vpop.eup %1943 }
 0x806   :  { %v1009_v15 = vmul.f32 %v1944_v23, %v1006_v22  ;;  %vm1015_vm11 = vweird.f32 %v1944_v23  ;;  %v157_v22 = vstv %s2420_s20 }
 0x807   :  { %vm1016_vm13 = vmor %vm1014_vm12, %vm1015_vm11 }
 0x808   :  { %v1010_v24 = vmul.f32 %v1944_v23, %v1009_v15 }
 0x80a   :  { %v1011_v25 = vmul.f32 0.5, %v1010_v24  ;;  %v2026_v24 = vmov 0.0  }
 0x80c   :  { %v1012_v17 = vsub.f32 1.5, %v1011_v25 }
 0x80e   :  { %v1013_v26 = vmul.f32 %v1944_v23, %v1012_v17 }
 0x810   :  { %v1017_v16 = vsel %vm1016_vm13, %v1944_v23, %v1013_v26 }
 0x811   :  { %v1028_v28 = vmul.f32 %v1017_v16, %v987_v5 }
 0x813   :  { %v2382_v29 = vsel %vm2375_vm14, %v1028_v28, %v2291_v6 }
 0x814   :  { %1045 = vrot.lane.b32.xlu0 %v2382_v29, %s2023_s18 }
 0x85b   :  { %v1005_v33 = vpop.xlane.xlu2 %1004 }
 0x85c   :  { %v1007_v34 = vmax.f32 %v1005_v33, 1e-24 }
 0x85e   :  { %1945 = vrsqrt.f32 %v1007_v34  ;;  %vm1024_vm5 = vweird.f32 %v1007_v34 }
 0x864   :  { %v1946_v35 = vpop.eup %1945 }
 0x865   :  { %v1019_v36 = vmul.f32 %v1946_v35, %v1007_v34  ;;  %vm1025_vm15 = vweird.f32 %v1946_v35 }
 0x866   :  { %vm1026_vm6 = vmor %vm1024_vm5, %vm1025_vm15  ;;  %vm158_vm5 = vcmp.lt.s32.totalorder %v156_v21, %v157_v22  ;;  %v1297_v21 = vand.u32 127, %v155_v20  ;;  %v1913_v22 = vld [vmem:[%s2604_s21] ss:$0 sm:$0xff] }
 0x867   :  { %v1020_v37 = vmul.f32 %v1946_v35, %v1019_v36  ;;  %v2426_v25 = vsel %vm158_vm5, 1.0, %v2026_v24 }
 0x868   :  { %v2430_v26 = vrot.slane %v2426_v25, 2  ;;  %vm1300_vm5 = vcmp.eq.s32.totalorder %v1297_v21, 1 }
 0x869   :  { %v1021_v6 = vmul.f32 0.5, %v1020_v37 }
 0x86b   :  { %v1022_v38 = vsub.f32 1.5, %v1021_v6 }
 0x86d   :  { %v1023_v39 = vmul.f32 %v1946_v35, %v1022_v38 }
 0x86f   :  { %v1027_v40 = vsel %vm1026_vm6, %v1946_v35, %v1023_v39  ;;  %vm1137_vm6 = vcmask 128000  }
 0x870   :  { %v1029_v41 = vmul.f32 %v1027_v40, %v988_v13 }
 0x872   :  { %v2393_v42 = vsel %vm2375_vm14, %v1029_v41, %v2302_v10 }
 0x873   :  { %1047 = vrot.lane.b32.xlu0 %v2393_v42, %s2023_s18 }
 0x886   :  { %v2397_v43 = vpop.permute.xlu0 %1045 }
 0x887   :  { %1833 = vmatmul.msk.f32.vlgmr.msra.gmra.mxu2 %vm188_vm1, %v2397_v43 }
 0x8e5   :  { %v2401_v44 = vpop.permute.xlu0 %1047 }
 0x8e6   :  { %1834 = vmatmul.msk.f32.gmra.mxu2 %vm188_vm1, %v2401_v44 }
 0x90a   :  { %v1070_v46 = vpop.f32.mrf.mxu2 }
 0x90b   :  { %v2406_v47 = vadd.f32 %v1911_v45, %v1070_v46 }
 0x90d   :  { %v1835_v10 = vmul.f32 -1.442695, %v2406_v47 }
 0x90f   :  { %1947 = vpow2.f32 %v1835_v10 }
 0x915   :  { %v1948_v48 = vpop.eup %1947 }
 0x916   :  { %v1082_v49 = vadd.f32 1.0, %v1948_v48 }
 0x918   :  { %1949 = vrcp.f32 %v1082_v49  ;;  %v1095_v53 = vand.u32 2147483648, %v1082_v49  ;;  %v1093_v55 = vand.u32 2147483647, %v1082_v49  ;;  %vm1089_vm8 = vweird.f32 %v1082_v49 }
 0x91a   :  { %v1096_v57 = vor.u32 1.1754944e-38, %v1095_v53  ;;  %vm1094_vm11 = vcmp.eq.f32.partialorder %v1093_v55, 8.507059e+37  ;;  %v1234_v53 = vld [vmem:[%s2601_s25 + $0x8] sm:$0xff] }
 0x91b   :  { %v1268_v55 = vld [vmem:[%s2602_s1 + $0x8] sm:$0xff] }
 0x91c   :  { %1290 = vmatpush.msra.mxu3 %v1268_v55  ;;  %v1345_v55 = vld [vmem:[%s2605_s17] sm:$0x3f] }
 0x91d   :  { %1841 = vmatpush.msk.msra.mxu0 %vm150_vm0, %v1345_v55  ;;  %v1487_v55 = vperm.slane %v2413_v60, 0 }
 0x91e   :  { %v1950_v50 = vpop.eup %1949 }
 0x91f   :  { %v1085_v51 = vmul.f32 %v1950_v50, %v1082_v49  ;;  %vm1090_vm7 = vweird.f32 %v1950_v50 }
 0x920   :  { %vm1091_vm9 = vmor %vm1089_vm8, %vm1090_vm7  ;;  %vm1187_vm7 = vcmask 1040384   ;;  %vm1190_vm8 = vcmask 123904  }
 0x921   :  { %v1086_v52 = vsub.f32 1.0, %v1085_v51  ;;  %v1236_v51 = vld [vmem:[%s2601_s25 + $0x18] sm:$0xff] }
 0x922   :  { %1256 = vmatpush.msrb.mxu1 %v1236_v51 }
 0x923   :  { %v1087_v54 = vmul.f32 %v1950_v50, %v1086_v52  ;;  %v1235_v52 = vld [vmem:[%s2601_s25 + $0x10] sm:$0xff] }
 0x924   :  { %1257 = vmatpush.msrb.mxu1 %v1235_v52 }
 0x925   :  { %v1088_v56 = vadd.f32 %v1950_v50, %v1087_v54  ;;  %v1233_v54 = vld [vmem:[%s2601_s25] sm:$0xff] }
 0x926   :  { %1258 = vmatpush.msrb.mxu1 %v1234_v53 }
 0x927   :  { %v1092_v58 = vsel %vm1091_vm9, %v1950_v50, %v1088_v56 }
 0x928   :  { %v2409_v59 = vsel %vm1094_vm11, %v1096_v57, %v1092_v58  ;;  %1259 = vmatpush.msrb.mxu1 %v1233_v54 }
 0x929   :  { %1116 = vperm.xlu0 %1900, %v2409_v59  }
 0x969   :  { %v1073_v4 = vpop.f32.mrf.mxu2 }
 0x96a   :  { %v2417_v62 = vadd.f32 %v1911_v45, %v1073_v4 }
 0x96c   :  { %v1836_v63 = vmul.f32 -1.442695, %v2417_v62 }
 0x96e   :  { %1951 = vpow2.f32 %v1836_v63 }
 0x974   :  { %v1952_v0 = vpop.eup %1951 }
 0x975   :  { %v1083_v5 = vadd.f32 1.0, %v1952_v0 }
 0x977   :  { %1953 = vrcp.f32 %v1083_v5  ;;  %v1110_v11 = vand.u32 2147483648, %v1083_v5  ;;  %v1108_v13 = vand.u32 2147483647, %v1083_v5  ;;  %vm1104_vm13 = vweird.f32 %v1083_v5 }
 0x979   :  { %v1111_v18 = vor.u32 1.1754944e-38, %v1110_v11  ;;  %vm1109_vm15 = vcmp.eq.f32.partialorder %v1108_v13, 8.507059e+37  ;;  %v1912_v13 = vld [vmem:[%s2603_s7] ss:$0 sm:$0xff] }
 0x97d   :  { %v1954_v7 = vpop.eup %1953 }
 0x97e   :  { %v1100_v8 = vmul.f32 %v1954_v7, %v1083_v5  ;;  %vm1105_vm12 = vweird.f32 %v1954_v7 }
 0x97f   :  { %vm1106_vm14 = vmor %vm1104_vm13, %vm1105_vm12  ;;  %vm1231_vm13 = vcmask 130048  }
 0x980   :  { %v1101_v9 = vsub.f32 1.0, %v1100_v8 }
 0x982   :  { %v1102_v12 = vmul.f32 %v1954_v7, %v1101_v9  ;;  %v1229_v9 = vpop.permute.xlu2 %1228 }
 0x984   :  { %v1103_v14 = vadd.f32 %v1954_v7, %v1102_v12  ;;  %v1267_v12 = vld [vmem:[%s2602_s1] sm:$0xff] }
 0x985   :  { %1291 = vmatpush.msra.mxu3 %v1267_v12  ;;  %v1386_v12 = vld [vmem:[%s2606_s13 + $0x20] sm:$0xff] }
 0x986   :  { %v1107_v19 = vsel %vm1106_vm14, %v1954_v7, %v1103_v14 }
 0x987   :  { %v1112_v3 = vsel %vm1109_vm15, %v1111_v18, %v1107_v19  ;;  %vm1299_vm15 = vcmp.eq.s32.totalorder %v1297_v21, 0 }
 0x988   :  { %1131 = vperm.xlu2 %1903, %v1112_v3   ;;  %1121 = vperm.xlu0 %1900, %v1112_v3  }
 0x990   :  { %1904 = vset.pattern.permute.xlu0 %v2025_v61 }
 0x99b   :  { %v1117_v23 = vpop.permute.xlu0 %1116 }
 0x99c   :  { %v1124_v15 = vmul.f32 %v1117_v23, %v2406_v47 }
 0x99e   :  { %v1136_v17 = vmul.f32 %v2426_v25, %v1124_v15  ;;  %v1157_v28 = vmul.f32 %v2430_v26, %v1124_v15 }
 0x9a0   :  { %v1138_v2 = vsel %vm1137_vm6, %v1136_v17, 0.0  ;;  %v1161_v32 = vrot.slane %v1157_v28, 6 }
 0x9a1   :  { %v1139_v16 = vrot.slane %v1138_v2, 4 }
 0x9a3   :  { %v1140_v30 = vadd.f32 %v1139_v16, %v1138_v2  ;;  %v1298_v16 = vcvt.s32.f32 %v1297_v21 }
 0x9a5   :  { %v1141_v34 = vrot.slane %v1140_v30, 2 }
 0x9a7   :  { %v1142_v6 = vadd.f32 %v1141_v34, %v1140_v30 }
 0x9a9   :  { %v1143_v40 = vrot.slane %v1142_v6, 1 }
 0x9ab   :  { %v1144_v46 = vadd.f32 %v1143_v40, %v1142_v6 }
 0x9fa   :  { %v1122_v27 = vpop.permute.xlu0 %1121 }
 0x9fb   :  { %v1125_v1 = vmul.f32 %v1122_v27, %v2417_v62 }
 0x9fd   :  { %v1158_v31 = vmul.f32 %v2430_v26, %v1125_v1  ;;  %v1132_v1 = vpop.permute.xlu2 %1131 }
 0x9fe   :  { %v1135_v30 = vmul.f32 %v1132_v1, %v2417_v62  ;;  %v1425_v1 = vld [vmem:[%s2609_s24 + $0x28] sm:$0xff] }
 0x9ff   :  { %v1162_v33 = vrot.slane %v1158_v31, 6  ;;  %1443 = vmatpush.msra.mxu1 %v1425_v1 }
 0xa01   :  { %v1163_v35 = vsel %vm274_vm2, %v1161_v32, %v1162_v33  ;;  %v1173_v32 = vmul.f32 %v2430_v26, %v1135_v30  ;;  %v1424_v30 = vld [vmem:[%s2609_s24 + $0x20] sm:$0xff] }
 0xa02   :  { %v1165_v36 = vsel %vm1137_vm6, %v1163_v35, 0.0  ;;  %vm1301_vm6 = vmor %vm1299_vm15, %vm1300_vm5  ;;  %1444 = vmatpush.msra.mxu1 %v1424_v30  ;;  %vm1380_vm5 = vcmask 392192   ;;  %v1472_v30 = vld [vmem:[%s2612_s2 + $0x10] sm:$0xff] }
 0xa03   :  { %v1166_v37 = vrot.slane %v1165_v36, 4 }
 0xa05   :  { %v1167_v38 = vadd.f32 %v1166_v37, %v1165_v36  ;;  %v1177_v36 = vrot.slane %v1173_v32, 6 }
 0xa07   :  { %v1168_v39 = vrot.slane %v1167_v38, 2 }
 0xa09   :  { %v1169_v41 = vadd.f32 %v1168_v39, %v1167_v38 }
 0xa0b   :  { %v1170_v45 = vrot.slane %v1169_v41, 1 }
 0xa0d   :  { %v1171_v10 = vadd.f32 %v1170_v45, %v1169_v41 }
 0xa0f   :  { %v1188_v48 = vsel %vm1187_vm7, %v1144_v46, %v1171_v10 }
 0xa10   :  { %v1189_v49 = vmul.f32 %v1188_v48, %v1188_v48 }
 0xa12   :  { %v1191_v50 = vsel %vm1190_vm8, %v1189_v49, 0.0 }
 0xa13   :  { %1192 = vadd.xlane.f32.xlu0 %v1191_v50 }
 0xa86   :  { %v1193_v56 = vpop.xlane.xlu0 %1192 }
 0xa87   :  { %v1194_v57 = vmax.f32 %v1193_v56, 1e-24  ;;  %v1335_v56 = vstv %s1334_s29 }
 0xa89   :  { %1955 = vrsqrt.f32 %v1194_v57  ;;  %vm1201_vm11 = vweird.f32 %v1194_v57 }
 0xa8f   :  { %v1956_v58 = vpop.eup %1955 }
 0xa90   :  { %v1196_v61 = vmul.f32 %v1956_v58, %v1194_v57  ;;  %vm1202_vm9 = vweird.f32 %v1956_v58 }
 0xa91   :  { %vm1203_vm12 = vmor %vm1201_vm11, %vm1202_vm9  ;;  %vm1303_vm9 = vcmask 41984  }
 0xa92   :  { %v1197_v4 = vmul.f32 %v1956_v58, %v1196_v61 }
 0xa94   :  { %v1198_v63 = vmul.f32 0.5, %v1197_v4 }
 0xa96   :  { %v1199_v0 = vsub.f32 1.5, %v1198_v63 }
 0xa98   :  { %v1200_v5 = vmul.f32 %v1956_v58, %v1199_v0 }
 0xa9a   :  { %v1204_v7 = vsel %vm1203_vm12, %v1956_v58, %v1200_v5  ;;  %vm1146_vm12 = vcmask 259200  }
 0xa9b   :  { %v2443_v8 = vmul.f32 %v1204_v7, %v1188_v48  ;;  %v1389_v7 = vld [vmem:[%s2606_s13 + $0x38] sm:$0xff] }
 0xa9c   :  { %1405 = vmatpush.msrb.mxu2 %v1389_v7 }
 0xa9d   :  { %v1232_v11 = vsel %vm1231_vm13, %v2443_v8, %v1229_v9  ;;  %v1388_v9 = vld [vmem:[%s2606_s13 + $0x30] sm:$0xff] }
 0xa9e   :  { %1837 = vmatmul.msk.f32.vlgmr.msrb.gmra.mxu1 %vm188_vm1, %v1232_v11  ;;  %v1387_v11 = vld [vmem:[%s2606_s13 + $0x28] sm:$0xff]  ;;  %1406 = vmatpush.msrb.mxu2 %v1388_v9 }
 0xaa0   :  { %1407 = vmatpush.msrb.mxu2 %v1387_v11  ;;  %v1577_v11 = vperm.slane %v2443_v8, 1 }
 0xaa2   :  { %1408 = vmatpush.msrb.mxu2 %v1386_v12 }
 0xb1b   :  { %v1261_v14 = vpop.f32.mrf.mxu1 }
 0xb1c   :  { %v1262_v18 = vadd.f32 %v1912_v13, %v1261_v14  ;;  %v1384_v13 = vld [vmem:[%s2606_s13 + $0x10] sm:$0xff] }
 0xb1e   :  { %vm1264_vm14 = vcmp.ge.f32.partialorder %v1262_v18, 0.0  ;;  %v1265_v19 = vmul.f32 0.2, %v1262_v18 }
 0xb20   :  { %v1266_v3 = vsel %vm1264_vm14, %v1262_v18, %v1265_v19  ;;  %vm1671_vm14 = vcmask 1024   ;;  %v1383_v19 = vld [vmem:[%s2606_s13 + $0x8] sm:$0xff] }
 0xb21   :  { %1838 = vmatmul.msk.f32.vlgmr.msra.gmra.mxu3 %vm1231_vm13, %v1266_v3  ;;  %vm2473_vm13 = vcmp.eq.s32.totalorder %v1335_v56, 1 }
 0xba4   :  { %v1293_v23 = vpop.f32.mrf.mxu3 }
 0xba5   :  { %v1294_v15 = vadd.f32 %v1913_v22, %v1293_v23 }
 0xba7   :  { %v2451_v17 = vsel %vm1301_vm6, -1e+30, %v1294_v15 }
 0xba8   :  { %v1304_v2 = vsel %vm1303_vm9, %v2451_v17, -inf }
 0xba9   :  { %1305 = vmax.xlane.f32.xlu1 %v1304_v2 }
 0xbc2   :  { %1127 = vperm.xlu1 %1902, %v2409_v59   ;;  %v1486_v59 = vperm.slane %v2443_v8, 0  ;;  %v1477_v8 = vld [vmem:[%s2612_s2 + $0x38] sm:$0xff] }
 0xc1c   :  { %v2456_v27 = vpop.xlane.xlu1 %1305 }
 0xc1d   :  { %vm1328_vm11 = vcmp.ge.f32.partialorder %v2451_v17, %v2456_v27 }
 0xc1e   :  { %v1329_v20 = vsel %vm1328_vm11, %v1298_v16, 6.0  ;;  %vm1454_vm11 = vcmask 254976  }
 0xc1f   :  { %v1330_v28 = vsel %vm1303_vm9, %v1329_v20, inf }
 0xc20   :  { %1331 = vmin.xlane.f32.xlu2 %v1330_v28  ;;  %v1382_v28 = vld [vmem:[%s2606_s13] sm:$0xff] }
 0xc34   :  { %v1128_v31 = vpop.permute.xlu1 %1127 }
 0xc35   :  { %v1134_v33 = vmul.f32 %v1128_v31, %v2406_v47  ;;  %v1423_v31 = vld [vmem:[%s2609_s24 + $0x18] sm:$0xff] }
 0xc36   :  { %1445 = vmatpush.msra.mxu1 %v1423_v31 }
 0xc37   :  { %v1145_v34 = vmul.f32 %v2426_v25, %v1134_v33  ;;  %v1172_v35 = vmul.f32 %v2430_v26, %v1134_v33 }
 0xc38   :  { %1494 = vrot.lane.b32.xlu2 %v1486_v59, %s2022_s14 }
 0xc39   :  { %v1147_v37 = vsel %vm1146_vm12, %v1145_v34, 0.0  ;;  %v1176_v6 = vrot.slane %v1172_v35, 6 }
 0xc3a   :  { %v1148_v38 = vrot.slane %v1147_v37, 4 }
 0xc3b   :  { %v1178_v62 = vsel %vm274_vm2, %v1176_v6, %v1177_v36  ;;  %v1422_v36 = vld [vmem:[%s2609_s24 + $0x10] sm:$0xff]  ;;  %v1420_v6 = vld [vmem:[%s2609_s24] sm:$0xff] }
 0xc3c   :  { %v1149_v39 = vadd.f32 %v1148_v38, %v1147_v37  ;;  %v1180_v40 = vsel %vm1146_vm12, %v1178_v62, 0.0  ;;  %1446 = vmatpush.msra.mxu1 %v1422_v36  ;;  %v1421_v37 = vld [vmem:[%s2609_s24 + $0x8] sm:$0xff]  ;;  %v1914_v38 = vld [vmem:[%s2610_s19] ss:$0 sm:$0xff] }
 0xc3d   :  { %v1181_v41 = vrot.slane %v1180_v40, 4 }
 0xc3e   :  { %v1150_v47 = vrot.slane %v1149_v39, 2  ;;  %1447 = vmatpush.msra.mxu1 %v1421_v37 }
 0xc3f   :  { %v1182_v45 = vadd.f32 %v1181_v41, %v1180_v40 }
 0xc40   :  { %v1151_v46 = vadd.f32 %v1150_v47, %v1149_v39  ;;  %1448 = vmatpush.msra.mxu1 %v1420_v6  ;;  %v1915_v47 = vld [vmem:[%s2611_s16] ss:$0 sm:$0xff]  ;;  %v1471_v6 = vld [vmem:[%s2612_s2 + $0x8] sm:$0xff] }
 0xc41   :  { %v1183_v10 = vrot.slane %v1182_v45, 2 }
 0xc42   :  { %v1152_v48 = vrot.slane %v1151_v46, 1 }
 0xc43   :  { %v1184_v49 = vadd.f32 %v1183_v10, %v1182_v45 }
 0xc44   :  { %v1153_v51 = vadd.f32 %v1152_v48, %v1151_v46 }
 0xc45   :  { %v1185_v50 = vrot.slane %v1184_v49, 1 }
 0xc47   :  { %v1186_v52 = vadd.f32 %v1185_v50, %v1184_v49  ;;  %v1578_v49 = vperm.slane %v2413_v60, 1  ;;  %v1307_v50 = vsub.f32 %v2451_v17, %v2456_v27 }
 0xc49   :  { %v1206_v53 = vsel %vm1187_vm7, %v1153_v51, %v1186_v52  ;;  %v1308_v51 = vmul.f32 1.442695, %v1307_v50 }
 0xc4a   :  { %v1207_v54 = vmul.f32 %v1206_v53, %v1206_v53 }
 0xc4c   :  { %1209 = vrot.lane.b32.xlu1 %v1207_v54, %s2027_s5  ;;  %v1656_v54 = vmul.f32 %v2430_v26, %v2393_v42 }
 0xc93   :  { %v1332_v58 = vpop.xlane.xlu2 %1331 }
 0xc94   :  { %v1337_v61 = vsel %vm2473_vm13, 2.0, %v1332_v58 }
 0xc95   :  { %vm1338_vm7 = vcmp.eq.f32.partialorder %v1298_v16, %v1337_v61  ;;  %vm1342_vm15 = vcmp.ne.f32.partialorder %v1337_v61, 2.0 }
 0xc96   :  { %v2480_v4 = vsel %vm1338_vm7, 1.0, %v2026_v24  ;;  %v1840_v63 = vsel %vm1342_vm15, 1.0, %v2026_v24  ;;  %v1385_v24 = vld [vmem:[%s2606_s13 + $0x18] sm:$0xff] }
 0xc97   :  { %1672 = vst.msk [vmem:[%s2190_s28] sm:$0x3] %vm1671_vm14, %v1840_v63  ;;  %1842 = vmatmul.msk.f32.vlgmr.msra.gmra.mxu0 %vm190_vm3, %v2480_v4  ;;  %1409 = vmatpush.msrb.mxu2 %v1385_v24  ;;  %s2029_s28 = smov 80   ;;  %v1481_v24 = vld [vmem:[%s2612_s2 + $0x58] sm:$0xff] }
 0xc98   :  { %1516 = vmatpush.msrb.mxu3 %v1481_v24  ;;  %1609 = vmatpush.msrb.mxu0 %v1481_v24 }
 0xc99   :  { %1410 = vmatpush.msrb.mxu2 %v1384_v13  ;;  %v1480_v13 = vld [vmem:[%s2612_s2 + $0x50] sm:$0xff] }
 0xc9a   :  { %1517 = vmatpush.msrb.mxu3 %v1480_v13  ;;  %1610 = vmatpush.msrb.mxu0 %v1480_v13 }
 0xc9b   :  { %1411 = vmatpush.msrb.mxu2 %v1383_v19  ;;  %v1478_v19 = vld [vmem:[%s2612_s2 + $0x40] sm:$0xff] }
 0xc9d   :  { %1412 = vmatpush.msrb.mxu2 %v1382_v28 }
 0xcbe   :  { %v1210_v0 = vpop.permute.xlu1 %1209 }
 0xcbf   :  { %v1212_v5 = vsel %vm1190_vm8, %v1210_v0, 0.0 }
 0xcc0   :  { %1213 = vadd.xlane.f32.xlu0 %v1212_v5 }
 0xcd4   :  { %1376 = vrot.lane.b32.xlu0 %v2413_v60, %s2028_s8 }
 0xcdc   :  { %1498 = vrot.lane.b32.xlu0 %v1487_v55, %s2029_s28 }
 0xd14   :  { %v1369_v33 = vpop.f32.mrf.mxu0 }
 0xd33   :  { %v1214_v14 = vpop.xlane.xlu0 %1213 }
 0xd34   :  { %v1215_v18 = vmax.f32 %v1214_v14, 1e-24  ;;  %v1479_v14 = vld [vmem:[%s2612_s2 + $0x48] sm:$0xff] }
 0xd35   :  { %1518 = vmatpush.msrb.mxu3 %v1479_v14  ;;  %1611 = vmatpush.msrb.mxu0 %v1479_v14 }
 0xd36   :  { %1957 = vrsqrt.f32 %v1215_v18  ;;  %vm1222_vm3 = vweird.f32 %v1215_v18 }
 0xd37   :  { %1959 = vpow2.f32 %v1308_v51  ;;  %1519 = vmatpush.msrb.mxu3 %v1478_v19  ;;  %1612 = vmatpush.msrb.mxu0 %v1478_v19 }
 0xd39   :  { %1520 = vmatpush.msrb.mxu3 %v1477_v8  ;;  %1613 = vmatpush.msrb.mxu0 %v1477_v8 }
 0xd3c   :  { %v1958_v3 = vpop.eup %1957 }
 0xd3d   :  { %v1217_v21 = vmul.f32 %v1958_v3, %v1215_v18  ;;  %vm1223_vm0 = vweird.f32 %v1958_v3  ;;  %v2513_v52 = vpop.eup %1959 }
 0xd3e   :  { %vm1224_vm8 = vmor %vm1222_vm3, %vm1223_vm0 }
 0xd3f   :  { %v1218_v22 = vmul.f32 %v1958_v3, %v1217_v21 }
 0xd41   :  { %v1219_v23 = vmul.f32 0.5, %v1218_v22  ;;  %v1475_v22 = vld [vmem:[%s2612_s2 + $0x28] sm:$0xff] }
 0xd43   :  { %v1220_v15 = vsub.f32 1.5, %v1219_v23 }
 0xd45   :  { %v1221_v2 = vmul.f32 %v1958_v3, %v1220_v15  ;;  %v1474_v15 = vld [vmem:[%s2612_s2 + $0x20] sm:$0xff] }
 0xd46   :  { %v1377_v32 = vpop.permute.xlu0 %1376 }
 0xd47   :  { %v1225_v16 = vsel %vm1224_vm8, %v1958_v3, %v1221_v2  ;;  %v1476_v3 = vld [vmem:[%s2612_s2 + $0x30] sm:$0xff] }
 0xd48   :  { %v1226_v20 = vmul.f32 %v1225_v16, %v1206_v53  ;;  %v1310_v53 = vsel %vm1303_vm9, %v2513_v52, 0.0  ;;  %1521 = vmatpush.msrb.mxu3 %v1476_v3  ;;  %1614 = vmatpush.msrb.mxu0 %v1476_v3 }
 0xd4a   :  { %1373 = vrot.lane.b32.xlu1 %v1226_v20, %s2024_s15  ;;  %1522 = vmatpush.msrb.mxu3 %v1475_v22  ;;  %v1473_v20 = vld [vmem:[%s2612_s2 + $0x18] sm:$0xff] }
 0xd4b   :  { %1615 = vmatpush.msrb.mxu0 %v1475_v22 }
 0xd4c   :  { %1523 = vmatpush.msrb.mxu3 %v1474_v15 }
 0xd4d   :  { %1616 = vmatpush.msrb.mxu0 %v1474_v15 }
 0xd4e   :  { %1524 = vmatpush.msrb.mxu3 %v1473_v20 }
 0xd4f   :  { %1617 = vmatpush.msrb.mxu0 %v1473_v20 }
 0xd50   :  { %1525 = vmatpush.msrb.mxu3 %v1472_v30 }
 0xd51   :  { %1618 = vmatpush.msrb.mxu0 %v1472_v30 }
 0xd52   :  { %1526 = vmatpush.msrb.mxu3 %v1471_v6 }
 0xd53   :  { %1619 = vmatpush.msrb.mxu0 %v1471_v6 }
 0xdbc   :  { %v1374_v59 = vpop.permute.xlu1 %1373 }
 0xdbd   :  { %v1379_v34 = vsel %vm188_vm1, %v1369_v33, %v1374_v59 }
 0xdbe   :  { %v1381_v35 = vsel %vm1380_vm5, %v1379_v34, %v1377_v32 }
 0xdbf   :  { %1843 = vmatmul.msk.f32.vlgmr.msrb.gmra.mxu2 %vm419_vm4, %v1381_v35 }
 0xe42   :  { %v1414_v62 = vpop.f32.mrf.mxu2 }
 0xe43   :  { %v1415_v39 = vadd.f32 %v1914_v38, %v1414_v62  ;;  %v1470_v38 = vld [vmem:[%s2612_s2] sm:$0xff]  ;;  %v1499_v62 = vpop.permute.xlu0 %1498 }
 0xe44   :  { %1527 = vmatpush.msrb.mxu3 %v1470_v38  ;;  %1620 = vmatpush.msrb.mxu0 %v1470_v38 }
 0xe45   :  { %vm1417_vm6 = vcmp.ge.f32.partialorder %v1415_v39, 0.0  ;;  %v1418_v40 = vmul.f32 0.2, %v1415_v39 }
 0xe47   :  { %v1419_v41 = vsel %vm1417_vm6, %v1415_v39, %v1418_v40  ;;  %v1495_v40 = vpop.permute.xlu2 %1494 }
 0xe48   :  { %1844 = vmatmul.msk.f32.vlgmr.msra.gmra.mxu1 %vm1380_vm5, %v1419_v41  ;;  %vm1503_vm5 = vcmask 654336  }
 0xec5   :  { %v1450_v45 = vpop.f32.mrf.mxu1 }
 0xec6   :  { %v1451_v46 = vadd.f32 %v1915_v47, %v1450_v45 }
 0xec8   :  { %v1453_v10 = vmul.f32 %v1451_v46, %v1451_v46 }
 0xeca   :  { %v1455_v48 = vsel %vm1454_vm11, %v1453_v10, 0.0 }
 0xecb   :  { %1456 = vadd.xlane.f32.xlu1 %v1455_v48 }
 0xee4   :  { %1589 = vrot.lane.b32.xlu1 %v1578_v49, %s2029_s28 }
 0xf0e   :  { %1311 = vadd.xlane.f32.xlu1 %v1310_v53 }
 0xf27   :  { %1661 = vrot.lane.b32.xlu1 %v1656_v54, %s2023_s18 }
 0xf3e   :  { %v1457_v56 = vpop.xlane.xlu1 %1456 }
 0xf3f   :  { %v1458_v58 = vmax.f32 %v1457_v56, 1e-24 }
 0xf41   :  { %1961 = vrsqrt.f32 %v1458_v58  ;;  %vm1465_vm14 = vweird.f32 %v1458_v58 }
 0xf47   :  { %v1962_v17 = vpop.eup %1961 }
 0xf48   :  { %v1460_v27 = vmul.f32 %v1962_v17, %v1458_v58  ;;  %vm1466_vm12 = vweird.f32 %v1962_v17 }
 0xf49   :  { %vm1467_vm7 = vmor %vm1465_vm14, %vm1466_vm12  ;;  %vm1666_vm14 = vcmask 261126  }
 0xf4a   :  { %v1461_v61 = vmul.f32 %v1962_v17, %v1460_v27 }
 0xf4c   :  { %v1462_v63 = vmul.f32 0.5, %v1461_v61 }
 0xf4e   :  { %v1463_v0 = vsub.f32 1.5, %v1462_v63 }
 0xf50   :  { %v1464_v5 = vmul.f32 %v1962_v17, %v1463_v0 }
 0xf52   :  { %v1468_v42 = vsel %vm1467_vm7, %v1962_v17, %v1464_v5  ;;  %vm1567_vm7 = vcmask 5120  }
 0xf53   :  { %v1469_v7 = vmul.f32 %v1468_v42, %v1451_v46 }
 0xf55   :  { %v1485_v60 = vperm.slane %v1469_v7, 0  ;;  %1669 = vst.msk [vmem:[%s2179_s3] sm:$0x3] %vm1454_vm11, %v1469_v7  ;;  %v1576_v9 = vperm.slane %v1469_v7, 1  ;;  %s2613_s3 = sld [smem:[#allocation19_spill]] }
 0xf56   :  { %v2527_v12 = vpop.permute.xlu1 %1589 }
 0xf57   :  { %1490 = vrot.lane.b32.xlu0 %v1485_v60, %s2021_s10 }
 0xf5b   :  { %v1916_v55 = vld [vmem:[%s2613_s3] ss:$0 sm:$0xff] }
 0xf5f   :  { %1581 = vrot.lane.b32.xlu0 %v1576_v9, %s2021_s10  ;;  %v1569_v9 = vmul.f32 %v2426_v25, %v2382_v29 }
 0xf67   :  { %1585 = vrot.lane.b32.xlu0 %v1577_v11, %s2022_s14  ;;  %v1655_v11 = vmul.f32 %v2430_v26, %v2382_v29 }
 0xf81   :  { %v1312_v18 = vpop.xlane.xlu1 %1311 }
 0xf82   :  { %1963 = vrcp.f32 %v1312_v18  ;;  %v1324_v16 = vand.u32 2147483648, %v1312_v18  ;;  %v1322_v1 = vand.u32 2147483647, %v1312_v18  ;;  %vm1318_vm0 = vweird.f32 %v1312_v18 }
 0xf84   :  { %v1325_v32 = vor.u32 1.1754944e-38, %v1324_v16  ;;  %vm1323_vm8 = vcmp.eq.f32.partialorder %v1322_v1, 8.507059e+37 }
 0xf88   :  { %v1964_v21 = vpop.eup %1963 }
 0xf89   :  { %v1314_v23 = vmul.f32 %v1964_v21, %v1312_v18  ;;  %vm1319_vm15 = vweird.f32 %v1964_v21 }
 0xf8a   :  { %vm1320_vm3 = vmor %vm1318_vm0, %vm1319_vm15 }
 0xf8b   :  { %v1315_v2 = vsub.f32 1.0, %v1314_v23 }
 0xf8d   :  { %v1316_v28 = vmul.f32 %v1964_v21, %v1315_v2 }
 0xf8f   :  { %v1317_v31 = vadd.f32 %v1964_v21, %v1316_v28 }
 0xf91   :  { %v1321_v33 = vsel %vm1320_vm3, %v1964_v21, %v1317_v31 }
 0xf92   :  { %v1326_v59 = vsel %vm1323_vm8, %v1325_v32, %v1321_v33 }
 0xf93   :  { %v1327_v34 = vmul.f32 %v2513_v52, %v1326_v59 }
 0xf95   :  { %v1341_v35 = vsel %vm2473_vm13, %v2480_v4, %v1327_v34  ;;  %vm1508_vm13 = vcmask 785408  }
 0xf96   :  { %1670 = vst.msk [vmem:[#allocation5] sm:$0x3] %vm1303_vm9, %v1341_v35 }
 0xf99   :  { %v1662_v36 = vpop.permute.xlu1 %1661 }
 0xf9a   :  { %1851 = vst.msk [vmem:[%s2174_s27 + $0xa] sm:$0xf] %vm1002_vm10, %v1662_v36 }
 0xf9d   :  { %v1695_v37 = vld [vmem:[#allocation5] sm:$0x3] }
 0xf9e   :  { %1696 = vst [vmem:[%s2192_s22] sm:$0x3] %v1695_v37  ;;  %s2614_s22 = sld [smem:[#allocation20_spill]] }
 0xfa4   :  { %v1917_v58 = vld [vmem:[%s2614_s22] ss:$0 sm:$0xff] }
 0xfc9   :  { %v1491_v39 = vpop.permute.xlu0 %1490 }
 0xfca   :  { %v1501_v57 = vsel %vm188_vm1, %v2397_v43, %v1491_v39 }
 0xfcb   :  { %v1502_v4 = vsel %vm419_vm4, %v1501_v57, %v1495_v40 }
 0xfcc   :  { %v1504_v41 = vsel %vm1503_vm5, %v1502_v4, %v1499_v62 }
 0xfcd   :  { %1845 = vmatmul.msk.f32.vlgmr.msrb.gmra.mxu3 %vm1508_vm13, %v1504_v41 }
 0xfd1   :  { %v1582_v47 = vpop.permute.xlu0 %1581 }
 0xfd2   :  { %v1592_v45 = vsel %vm188_vm1, %v2397_v43, %v1582_v47  ;;  %v1593_v46 = vsel %vm188_vm1, %v2401_v44, %v1582_v47  ;;  %vm1539_vm1 = vcmask 390144  }
 0xfd9   :  { %v1586_v10 = vpop.permute.xlu0 %1585 }
 0xfda   :  { %v1594_v48 = vsel %vm419_vm4, %v1592_v45, %v1586_v10  ;;  %v1595_v49 = vsel %vm419_vm4, %v1593_v46, %v1586_v10 }
 0xfdb   :  { %v1596_v50 = vsel %vm1503_vm5, %v1594_v48, %v2527_v12  ;;  %v1597_v51 = vsel %vm1503_vm5, %v1595_v49, %v2527_v12  ;;  %v1918_v12 = vld [vmem:[#allocation2] ss:$0 sm:$0xff] }
 0xfdc   :  { %v1600_v52 = vrot.slane %v1596_v50, 6  ;;  %v1601_v53 = vrot.slane %v1597_v51, 6 }
 0xfde   :  { %v1602_v54 = vsel %vm274_vm2, %v1600_v52, %v1601_v53  ;;  %vm1574_vm2 = vcmask 259072  }
 0xfdf   :  { %1847 = vmatmul.msk.f32.vlgmr.msrb.gmra.mxu0 %vm1508_vm13, %v1602_v54 }
0x1050   :  { %v1529_v56 = vpop.f32.mrf.mxu3 }
0x1051   :  { %v1530_v43 = vadd.f32 %v1916_v55, %v1529_v56 }
0x1053   :  { %vm1532_vm10 = vcmp.ge.f32.partialorder %v1530_v43, 0.0  ;;  %v1533_v44 = vmul.f32 0.2, %v1530_v43 }
0x1055   :  { %v1534_v17 = vsel %vm1532_vm10, %v1530_v43, %v1533_v44 }
0x1056   :  { %v1538_v27 = vmul.f32 %v1917_v58, %v1534_v17 }
0x1058   :  { %v1540_v61 = vsel %vm1539_vm1, %v1538_v27, 0.0 }
0x1059   :  { %1541 = vadd.xlane.f32.xlu2 %v1540_v61 }
0x105c   :  { %v1622_v63 = vpop.f32.mrf.mxu0 }
0x105d   :  { %v1623_v0 = vadd.f32 %v1916_v55, %v1622_v63 }
0x105f   :  { %vm1625_vm4 = vcmp.ge.f32.partialorder %v1623_v0, 0.0  ;;  %v1626_v5 = vmul.f32 0.2, %v1623_v0 }
0x1061   :  { %v1627_v42 = vsel %vm1625_vm4, %v1623_v0, %v1626_v5 }
0x1062   :  { %v1628_v7 = vmul.f32 %v1917_v58, %v1627_v42 }
0x1064   :  { %v1629_v60 = vsel %vm1539_vm1, %v1628_v7, 0.0 }
0x1065   :  { %1630 = vadd.xlane.f32.xlu0 %v1629_v60 }
0x1071   :  { %1571 = vrot.lane.b32.xlu2 %v1569_v9, %s2023_s18 }
0x1079   :  { %1659 = vrot.lane.b32.xlu0 %v1655_v11, %s2023_s18 }
0x10cc   :  { %v1542_v24 = vpop.xlane.xlu2 %1541 }
0x10cd   :  { %v1546_v13 = vadd.f32 %v1918_v12, %v1542_v24 }
0x10cf   :  { %v1846_v14 = vmul.f32 -1.442695, %v1546_v13 }
0x10d1   :  { %1965 = vpow2.f32 %v1846_v14 }
0x10d4   :  { %v1572_v18 = vpop.permute.xlu2 %1571 }
0x10d5   :  { %1575 = vst.msk [vmem:[%s2174_s27] sm:$0x3f] %vm1574_vm2, %v1572_v18 }
0x10d7   :  { %v1966_v19 = vpop.eup %1965 }
0x10d8   :  { %v1550_v8 = vadd.f32 1.0, %v1966_v19  ;;  %v1631_v3 = vpop.xlane.xlu0 %1630 }
0x10d9   :  { %v1632_v21 = vadd.f32 %v1918_v12, %v1631_v3 }
0x10da   :  { %1967 = vrcp.f32 %v1550_v8  ;;  %v1562_v2 = vand.u32 2147483648, %v1550_v8  ;;  %v1560_v28 = vand.u32 2147483647, %v1550_v8  ;;  %vm1556_vm6 = vweird.f32 %v1550_v8 }
0x10db   :  { %v1848_v22 = vmul.f32 -1.442695, %v1632_v21 }
0x10dc   :  { %v1563_v30 = vor.u32 1.1754944e-38, %v1562_v2  ;;  %vm1561_vm12 = vcmp.eq.f32.partialorder %v1560_v28, 8.507059e+37 }
0x10dd   :  { %1969 = vpow2.f32 %v1848_v22 }
0x10e0   :  { %v1968_v23 = vpop.eup %1967 }
0x10e1   :  { %v1552_v15 = vmul.f32 %v1968_v23, %v1550_v8  ;;  %vm1557_vm9 = vweird.f32 %v1968_v23 }
0x10e2   :  { %vm1558_vm11 = vmor %vm1556_vm6, %vm1557_vm9 }
0x10e3   :  { %v1970_v29 = vpop.eup %1969  ;;  %v1553_v26 = vsub.f32 1.0, %v1552_v15 }
0x10e4   :  { %v1636_v16 = vadd.f32 1.0, %v1970_v29 }
0x10e5   :  { %v1554_v20 = vmul.f32 %v1968_v23, %v1553_v26 }
0x10e6   :  { %1971 = vrcp.f32 %v1636_v16  ;;  %v1648_v37 = vand.u32 2147483648, %v1636_v16  ;;  %v1646_v38 = vand.u32 2147483647, %v1636_v16  ;;  %vm1642_vm0 = vweird.f32 %v1636_v16 }
0x10e7   :  { %v1555_v1 = vadd.f32 %v1968_v23, %v1554_v20 }
0x10e8   :  { %v1649_v39 = vor.u32 1.1754944e-38, %v1648_v37  ;;  %vm1647_vm8 = vcmp.eq.f32.partialorder %v1646_v38, 8.507059e+37 }
0x10e9   :  { %v1559_v31 = vsel %vm1558_vm11, %v1968_v23, %v1555_v1 }
0x10ea   :  { %v1564_v32 = vsel %vm1561_vm12, %v1563_v30, %v1559_v31 }
0x10eb   :  { %v1566_v33 = vmul.f32 %v2426_v25, %v1564_v32  ;;  %v1660_v59 = vpop.permute.xlu0 %1659 }
0x10ec   :  { %v1972_v34 = vpop.eup %1971  ;;  %1850 = vst.msk [vmem:[%s2174_s27 + $0x2] sm:$0xc0] %vm1666_vm14, %v1660_v59 }
0x10ed   :  { %1568 = vst.msk [vmem:[%s2184_s12] sm:$0x3f] %vm1567_vm7, %v1566_v33  ;;  %v1638_v35 = vmul.f32 %v1972_v34, %v1636_v16  ;;  %vm1643_vm15 = vweird.f32 %v1972_v34 }
0x10ee   :  { %vm1644_vm3 = vmor %vm1642_vm0, %vm1643_vm15 }
0x10ef   :  { %v1639_v36 = vsub.f32 1.0, %v1638_v35 }
0x10f1   :  { %v1640_v6 = vmul.f32 %v1972_v34, %v1639_v36 }
0x10f3   :  { %v1641_v62 = vadd.f32 %v1972_v34, %v1640_v6 }
0x10f5   :  { %v1645_v40 = vsel %vm1644_vm3, %v1972_v34, %v1641_v62 }
0x10f6   :  { %v1650_v57 = vsel %vm1647_vm8, %v1649_v39, %v1645_v40 }
0x10f7   :  { %v1652_v4 = vmul.f32 %v2426_v25, %v1650_v57 }
0x10f9   :  { %1849 = vst.msk [vmem:[%s2184_s12 + $0x8] sm:$0x3f] %vm1567_vm7, %v1652_v4 }
0x10fa   :  { %1726 = vsyncpa [#allocation4], 1 }

</bundles_post_ra>
